<compile_context>
chip_gen: v6e
topology: v6e:2x2x1
jax: 0.10.0
libtpu: 0.0.40
codegen_flags: <defaults>
</compile_context>

<pallas_src>
import functools
import math

import jax
import jax.numpy as jnp
from jax.experimental import pallas as pl
from jax.experimental.pallas import tpu as pltpu


def _round_up(x, m):
    return ((x + m - 1) // m) * m


def _pick_batch_block(n, per_image_bytes):
    """Largest divisor of n that is <= 8 and fits a ~4 MiB per-step budget."""
    cap = int(max(1, min(8, (4 << 20) // max(per_image_bytes, 1))))
    for d in range(min(n, cap), 0, -1):
        if n % d == 0:
            return d
    return 1


# ------------------------------ Pallas kernel ------------------------------ #

def _resize_conv3x3_kernel(xf_ref, w_ref, o_ref, *, ws, m_pad):
    """3x3 conv on a zero-padded, CHW-flattened image block.

    xf_ref: (nb, Cin_p, Lp)   padded image, rows flattened with stride `ws`;
                              tap (kh, kw) of output position p lives at
                              flat index p + kh*ws + kw.
    w_ref:  (3, Cout_p, 3*Cin_p)  weights, [kh, o, kw*Cin_p + c].
    o_ref:  (nb, Cout_p, m_pad)   lane-dense, already NCHW-flattened output.
    """
    nb = xf_ref.shape[0]
    for b in range(nb):
        xb = xf_ref[b]                                      # (Cin_p, Lp)
        acc = None
        for kh in range(3):
            q = kh * ws
            # Per-kh tap group: 3 shifted lane-windows, concatenated on the
            # (sublane) channel axis -> (3*Cin_p, m_pad).
            taps = jnp.concatenate(
                [xb[:, q + kw:q + kw + m_pad] for kw in range(3)], axis=0)
            # NOTE: with small Cout the MXU row dim is underutilized; for real
            # nets Cout >= 128/256 fills it.  Accumulate across kh (3 dots).
            part = jnp.dot(w_ref[kh], taps,
                           preferred_element_type=jnp.float32)
            acc = part if acc is None else acc + part
        o_ref[b] = acc.astype(o_ref.dtype)


# -------------------------------- wrapper ---------------------------------- #

def resize_conv3x3_forward(x, weight, scale_factor=None, shape=None,
                           compute_dtype=jnp.bfloat16):
    """ResizeConv3x3.forward(x, scale_factor, shape).

    x: (N, Cin, H, W) NCHW; weight: (Cout, Cin, 3, 3) OIHW, no bias.
    Matches the PyTorch module: when `shape` is None the module forces
    scale_factor=1, i.e. the resize is the identity, so `scale_factor` is
    effectively unused (kept for signature fidelity).
    """
    del scale_factor
    n, cin, h, w = x.shape
    cout = weight.shape[0]
    x = x.astype(jnp.float32)
    weight = weight.astype(jnp.float32)
    in_dtype = jnp.dtype(compute_dtype)

    if shape is None:
        ho, wo = h, w
    else:
        ho, wo = int(shape[0]), int(shape[1])

    # ---- geometry
    sub = 16 if in_dtype.itemsize == 2 else 8       # packed sublane multiple
    cin_p = _round_up(cin, sub)
    cout_p = _round_up(cout, 8)
    ws = wo + 2                                     # padded row stride
    m = ho * ws                                     # valid flattened columns
    m_pad = _round_up(m, 128)                       # lane-dense output width
    # Lp big enough that every tap slice (offset <= 2*ws+2) of width m_pad is
    # in-bounds; the tail is zero so the extra (cropped) columns stay defined.
    lp = _round_up(max((ho + 2) * ws, 2 * ws + 2 + m_pad), 128)

    # ---- fused nearest-resize + zero-pad + CHW-flatten: ONE gather + select
    p = jnp.arange(lp)
    row = p // ws
    col = p - row * ws
    src_h = jnp.clip((row - 1) * h // ho, 0, h - 1)
    src_w = jnp.clip((col - 1) * w // wo, 0, w - 1)
    ci = jnp.arange(cin_p)
    src_c = jnp.minimum(ci, cin - 1)
    valid = (((row >= 1) & (row <= ho) & (col >= 1) & (col <= wo))[None, :]
             & (ci < cin)[:, None])                                 # (Cin_p, Lp)
    xf = x[:, src_c[:, None], src_h[None, :], src_w[None, :]]       # (N, Cin_p, Lp)
    xf = jnp.where(valid[None], xf, 0.0).astype(compute_dtype)

    # ---- weights: OIHW -> (kh, Cout_p, kw*Cin_p + c)
    wp = jnp.pad(weight, ((0, cout_p - cout), (0, cin_p - cin), (0, 0), (0, 0)))
    w_lhs = jnp.transpose(wp, (2, 0, 3, 1)).reshape(3, cout_p, 3 * cin_p)
    w_lhs = w_lhs.astype(compute_dtype)

    # ---- batch-block size (amortize per-grid-step overhead at small shapes)
    per_img = cin_p * lp * in_dtype.itemsize + cout_p * m_pad * 4
    nb = _pick_batch_block(n, per_img)

    # ---- VMEM budget: double-buffered I/O + per-kh tap temp + accumulator
    taps_bytes = 3 * cin_p * m_pad * in_dtype.itemsize
    vmem_est = (2 * nb * per_img + 2 * w_lhs.size * in_dtype.itemsize
                + 2 * taps_bytes + 2 * cout_p * m_pad * 4)
    ckw = dict(dimension_semantics=("parallel",))
    if vmem_est > (16 << 20):
        ckw["vmem_limit_bytes"] = min(int(1.25 * vmem_est), 64 << 20)

    kernel = functools.partial(_resize_conv3x3_kernel, ws=ws, m_pad=m_pad)
    out = pl.pallas_call(
        kernel,
        out_shape=jax.ShapeDtypeStruct((n, cout_p, m_pad), jnp.float32),
        grid=(n // nb,),
        in_specs=[
            pl.BlockSpec((nb, cin_p, lp), lambda i: (i, 0, 0)),
            pl.BlockSpec((3, cout_p, 3 * cin_p), lambda i: (0, 0, 0)),
        ],
        out_specs=pl.BlockSpec((nb, cout_p, m_pad), lambda i: (i, 0, 0)),
        compiler_params=pltpu.CompilerParams(**ckw),
    )(xf, w_lhs)

    # Crop channel / row-stride / lane padding; layout is already NCHW.
    out = out[:, :cout, :m].reshape(n, cout, ho, ws)[:, :, :, :wo]
    return out


# --------------------------- pure-JAX reference ----------------------------- #

def resize_conv3x3_reference(x, weight, scale_factor=None, shape=None):
    del scale_factor
    if shape is not None:
        n, c, h, w = x.shape
        ih = (jnp.arange(int(shape[0])) * h) // int(shape[0])
        iw = (jnp.arange(int(shape[1])) * w) // int(shape[1])
        x = x[:, :, ih][:, :, :, iw]
    return jax.lax.conv_general_dilated(
        x, weight, (1, 1), [(1, 1), (1, 1)],
        dimension_numbers=("NCHW", "OIHW", "NCHW"))


def _conv3x3_init(key, in_planes, out_planes):
    fan_in = in_planes * 9
    bound = 1.0 / math.sqrt(fan_in)
    return jax.random.uniform(key, (out_planes, in_planes, 3, 3),
                              jnp.float32, -bound, bound)


# ---------------------------------- main ------------------------------------ #

if __name__ == "__main__":
    key = jax.random.PRNGKey(0)
    kx, kw1, kw2 = jax.random.split(key, 3)
    x = jax.random.normal(kx, (2, 4, 16, 16), jnp.float32)      # NCHW

    # The kernel computes in bf16 (f32 accumulate); compare against the f32
    # XLA reference run on bf16-rounded inputs so the check stays tight.
    def q(a):
        return a.astype(jnp.bfloat16).astype(jnp.float32)

    # Case 1: nearest resize 16x16 -> 32x32, channels 4 -> 8.
    w_up = _conv3x3_init(kw1, 4, 8)
    out_up = jax.block_until_ready(resize_conv3x3_forward(x, w_up, shape=(32, 32)))
    ref_up = resize_conv3x3_reference(q(x), q(w_up), shape=(32, 32))
    assert out_up.shape == (2, 8, 32, 32)
    assert bool(jnp.allclose(out_up, ref_up, atol=1e-2, rtol=1e-2)), \
        float(jnp.max(jnp.abs(out_up - ref_up)))

    # Case 2: shape=None (identity resize, scale_factor forced to 1), 4 -> 4.
    w_id = _conv3x3_init(kw2, 4, 4)
    out_id = jax.block_until_ready(resize_conv3x3_forward(x, w_id, shape=None))
    ref_id = resize_conv3x3_reference(q(x), q(w_id), shape=None)
    assert out_id.shape == (2, 4, 16, 16)
    assert bool(jnp.allclose(out_id, ref_id, atol=1e-2, rtol=1e-2)), \
        float(jnp.max(jnp.abs(out_id - ref_id)))

    print("KERNEL_OK")
</pallas_src>

<mosaic_0001>
module attributes {stable_mosaic.version = 11 : i64} {
  func.func @_resize_conv3x3_kernel(%arg0: i32, %arg1: memref<2x16x1280xbf16, #tpu.memory_space<vmem>>, %arg2: memref<3x8x48xbf16, #tpu.memory_space<vmem>>, %arg3: memref<2x8x1152xf32, #tpu.memory_space<vmem>>) attributes {dimension_semantics = [#tpu.dimension_semantics<parallel>], iteration_bounds = array<i64: 1>, scalar_prefetch = 0 : i64, scratch_operands = 0 : i64, tpu.core_type = #tpu.core_type<tc>, window_params = [{transform_indices = @transform_0, window_bounds = array<i64: 2, 16, 1280>}, {pipeline_mode = #tpu.pipeline_mode<synchronous>, transform_indices = @transform_1, window_bounds = array<i64: 3, 8, 48>}, {transform_indices = @transform_2, window_bounds = array<i64: 2, 8, 1152>}]} {
    %c0 = arith.constant 0 : index
    %c0_0 = arith.constant 0 : index
    %c0_1 = arith.constant 0 : index
    %0 = vector.load %arg1[%c0, %c0_0, %c0_1] : memref<2x16x1280xbf16, #tpu.memory_space<vmem>>, vector<1x16x1280xbf16>
    %1 = vector.shape_cast %0 : vector<1x16x1280xbf16> to vector<16x1280xbf16>
    %2 = vector.extract_strided_slice %1 {offsets = [0, 0], sizes = [16, 1152], strides = [1, 1]} : vector<16x1280xbf16> to vector<16x1152xbf16>
    %3 = vector.extract_strided_slice %1 {offsets = [0, 1], sizes = [16, 1152], strides = [1, 1]} : vector<16x1280xbf16> to vector<16x1152xbf16>
    %4 = vector.extract_strided_slice %1 {offsets = [0, 2], sizes = [16, 1152], strides = [1, 1]} : vector<16x1280xbf16> to vector<16x1152xbf16>
    %5 = tpu.concatenate %2, %3, %4 in 0 : vector<16x1152xbf16>, vector<16x1152xbf16>, vector<16x1152xbf16> -> vector<48x1152xbf16>
    %c0_2 = arith.constant 0 : index
    %c0_3 = arith.constant 0 : index
    %c0_4 = arith.constant 0 : index
    %6 = vector.load %arg2[%c0_2, %c0_3, %c0_4] : memref<3x8x48xbf16, #tpu.memory_space<vmem>>, vector<1x8x48xbf16>
    %7 = vector.shape_cast %6 : vector<1x8x48xbf16> to vector<8x48xbf16>
    %cst = arith.constant dense<0.000000e+00> : vector<8x1152xf32>
    %8 = tpu.matmul %7, %5, %cst {dimension_numbers = #tpu.dot_dimension_numbers<[1], [0], [0], [1], [0, 0, 1, 1], [], []>} : vector<8x48xbf16>, vector<48x1152xbf16>, vector<8x1152xf32> -> vector<8x1152xf32>
    %9 = vector.extract_strided_slice %1 {offsets = [0, 34], sizes = [16, 1152], strides = [1, 1]} : vector<16x1280xbf16> to vector<16x1152xbf16>
    %10 = vector.extract_strided_slice %1 {offsets = [0, 35], sizes = [16, 1152], strides = [1, 1]} : vector<16x1280xbf16> to vector<16x1152xbf16>
    %11 = vector.extract_strided_slice %1 {offsets = [0, 36], sizes = [16, 1152], strides = [1, 1]} : vector<16x1280xbf16> to vector<16x1152xbf16>
    %12 = tpu.concatenate %9, %10, %11 in 0 : vector<16x1152xbf16>, vector<16x1152xbf16>, vector<16x1152xbf16> -> vector<48x1152xbf16>
    %c1 = arith.constant 1 : index
    %c0_5 = arith.constant 0 : index
    %c0_6 = arith.constant 0 : index
    %13 = vector.load %arg2[%c1, %c0_5, %c0_6] : memref<3x8x48xbf16, #tpu.memory_space<vmem>>, vector<1x8x48xbf16>
    %14 = vector.shape_cast %13 : vector<1x8x48xbf16> to vector<8x48xbf16>
    %cst_7 = arith.constant dense<0.000000e+00> : vector<8x1152xf32>
    %15 = tpu.matmul %14, %12, %cst_7 {dimension_numbers = #tpu.dot_dimension_numbers<[1], [0], [0], [1], [0, 0, 1, 1], [], []>} : vector<8x48xbf16>, vector<48x1152xbf16>, vector<8x1152xf32> -> vector<8x1152xf32>
    %16 = arith.addf %8, %15 : vector<8x1152xf32>
    %17 = vector.extract_strided_slice %1 {offsets = [0, 68], sizes = [16, 1152], strides = [1, 1]} : vector<16x1280xbf16> to vector<16x1152xbf16>
    %18 = vector.extract_strided_slice %1 {offsets = [0, 69], sizes = [16, 1152], strides = [1, 1]} : vector<16x1280xbf16> to vector<16x1152xbf16>
    %19 = vector.extract_strided_slice %1 {offsets = [0, 70], sizes = [16, 1152], strides = [1, 1]} : vector<16x1280xbf16> to vector<16x1152xbf16>
    %20 = tpu.concatenate %17, %18, %19 in 0 : vector<16x1152xbf16>, vector<16x1152xbf16>, vector<16x1152xbf16> -> vector<48x1152xbf16>
    %c2 = arith.constant 2 : index
    %c0_8 = arith.constant 0 : index
    %c0_9 = arith.constant 0 : index
    %21 = vector.load %arg2[%c2, %c0_8, %c0_9] : memref<3x8x48xbf16, #tpu.memory_space<vmem>>, vector<1x8x48xbf16>
    %22 = vector.shape_cast %21 : vector<1x8x48xbf16> to vector<8x48xbf16>
    %cst_10 = arith.constant dense<0.000000e+00> : vector<8x1152xf32>
    %23 = tpu.matmul %22, %20, %cst_10 {dimension_numbers = #tpu.dot_dimension_numbers<[1], [0], [0], [1], [0, 0, 1, 1], [], []>} : vector<8x48xbf16>, vector<48x1152xbf16>, vector<8x1152xf32> -> vector<8x1152xf32>
    %24 = arith.addf %16, %23 : vector<8x1152xf32>
    %c0_11 = arith.constant 0 : index
    %c0_12 = arith.constant 0 : index
    %c0_13 = arith.constant 0 : index
    %25 = vector.load %arg3[%c0_11, %c0_12, %c0_13] : memref<2x8x1152xf32, #tpu.memory_space<vmem>>, vector<1x8x1152xf32>
    %26 = vector.shape_cast %25 : vector<1x8x1152xf32> to vector<8x1152xf32>
    %27 = vector.shape_cast %24 : vector<8x1152xf32> to vector<1x8x1152xf32>
    tpu.vector_store %arg3[%c0_11, %c0_12, %c0_13], %27 {strides = array<i32>} : memref<2x8x1152xf32, #tpu.memory_space<vmem>>, vector<1x8x1152xf32>,
    %c1_14 = arith.constant 1 : index
    %c0_15 = arith.constant 0 : index
    %c0_16 = arith.constant 0 : index
    %28 = vector.load %arg1[%c1_14, %c0_15, %c0_16] : memref<2x16x1280xbf16, #tpu.memory_space<vmem>>, vector<1x16x1280xbf16>
    %29 = vector.shape_cast %28 : vector<1x16x1280xbf16> to vector<16x1280xbf16>
    %30 = vector.extract_strided_slice %29 {offsets = [0, 0], sizes = [16, 1152], strides = [1, 1]} : vector<16x1280xbf16> to vector<16x1152xbf16>
    %31 = vector.extract_strided_slice %29 {offsets = [0, 1], sizes = [16, 1152], strides = [1, 1]} : vector<16x1280xbf16> to vector<16x1152xbf16>
    %32 = vector.extract_strided_slice %29 {offsets = [0, 2], sizes = [16, 1152], strides = [1, 1]} : vector<16x1280xbf16> to vector<16x1152xbf16>
    %33 = tpu.concatenate %30, %31, %32 in 0 : vector<16x1152xbf16>, vector<16x1152xbf16>, vector<16x1152xbf16> -> vector<48x1152xbf16>
    %c0_17 = arith.constant 0 : index
    %c0_18 = arith.constant 0 : index
    %c0_19 = arith.constant 0 : index
    %34 = vector.load %arg2[%c0_17, %c0_18, %c0_19] : memref<3x8x48xbf16, #tpu.memory_space<vmem>>, vector<1x8x48xbf16>
    %35 = vector.shape_cast %34 : vector<1x8x48xbf16> to vector<8x48xbf16>
    %cst_20 = arith.constant dense<0.000000e+00> : vector<8x1152xf32>
    %36 = tpu.matmul %35, %33, %cst_20 {dimension_numbers = #tpu.dot_dimension_numbers<[1], [0], [0], [1], [0, 0, 1, 1], [], []>} : vector<8x48xbf16>, vector<48x1152xbf16>, vector<8x1152xf32> -> vector<8x1152xf32>
    %37 = vector.extract_strided_slice %29 {offsets = [0, 34], sizes = [16, 1152], strides = [1, 1]} : vector<16x1280xbf16> to vector<16x1152xbf16>
    %38 = vector.extract_strided_slice %29 {offsets = [0, 35], sizes = [16, 1152], strides = [1, 1]} : vector<16x1280xbf16> to vector<16x1152xbf16>
    %39 = vector.extract_strided_slice %29 {offsets = [0, 36], sizes = [16, 1152], strides = [1, 1]} : vector<16x1280xbf16> to vector<16x1152xbf16>
    %40 = tpu.concatenate %37, %38, %39 in 0 : vector<16x1152xbf16>, vector<16x1152xbf16>, vector<16x1152xbf16> -> vector<48x1152xbf16>
    %c1_21 = arith.constant 1 : index
    %c0_22 = arith.constant 0 : index
    %c0_23 = arith.constant 0 : index
    %41 = vector.load %arg2[%c1_21, %c0_22, %c0_23] : memref<3x8x48xbf16, #tpu.memory_space<vmem>>, vector<1x8x48xbf16>
    %42 = vector.shape_cast %41 : vector<1x8x48xbf16> to vector<8x48xbf16>
    %cst_24 = arith.constant dense<0.000000e+00> : vector<8x1152xf32>
    %43 = tpu.matmul %42, %40, %cst_24 {dimension_numbers = #tpu.dot_dimension_numbers<[1], [0], [0], [1], [0, 0, 1, 1], [], []>} : vector<8x48xbf16>, vector<48x1152xbf16>, vector<8x1152xf32> -> vector<8x1152xf32>
    %44 = arith.addf %36, %43 : vector<8x1152xf32>
    %45 = vector.extract_strided_slice %29 {offsets = [0, 68], sizes = [16, 1152], strides = [1, 1]} : vector<16x1280xbf16> to vector<16x1152xbf16>
    %46 = vector.extract_strided_slice %29 {offsets = [0, 69], sizes = [16, 1152], strides = [1, 1]} : vector<16x1280xbf16> to vector<16x1152xbf16>
    %47 = vector.extract_strided_slice %29 {offsets = [0, 70], sizes = [16, 1152], strides = [1, 1]} : vector<16x1280xbf16> to vector<16x1152xbf16>
    %48 = tpu.concatenate %45, %46, %47 in 0 : vector<16x1152xbf16>, vector<16x1152xbf16>, vector<16x1152xbf16> -> vector<48x1152xbf16>
    %c2_25 = arith.constant 2 : index
    %c0_26 = arith.constant 0 : index
    %c0_27 = arith.constant 0 : index
    %49 = vector.load %arg2[%c2_25, %c0_26, %c0_27] : memref<3x8x48xbf16, #tpu.memory_space<vmem>>, vector<1x8x48xbf16>
    %50 = vector.shape_cast %49 : vector<1x8x48xbf16> to vector<8x48xbf16>
    %cst_28 = arith.constant dense<0.000000e+00> : vector<8x1152xf32>
    %51 = tpu.matmul %50, %48, %cst_28 {dimension_numbers = #tpu.dot_dimension_numbers<[1], [0], [0], [1], [0, 0, 1, 1], [], []>} : vector<8x48xbf16>, vector<48x1152xbf16>, vector<8x1152xf32> -> vector<8x1152xf32>
    %52 = arith.addf %44, %51 : vector<8x1152xf32>
    %c1_29 = arith.constant 1 : index
    %c0_30 = arith.constant 0 : index
    %c0_31 = arith.constant 0 : index
    %53 = vector.load %arg3[%c1_29, %c0_30, %c0_31] : memref<2x8x1152xf32, #tpu.memory_space<vmem>>, vector<1x8x1152xf32>
    %54 = vector.shape_cast %53 : vector<1x8x1152xf32> to vector<8x1152xf32>
    %55 = vector.shape_cast %52 : vector<8x1152xf32> to vector<1x8x1152xf32>
    tpu.vector_store %arg3[%c1_29, %c0_30, %c0_31], %55 {strides = array<i32>} : memref<2x8x1152xf32, #tpu.memory_space<vmem>>, vector<1x8x1152xf32>,
    return
  }
  func.func @transform_0(%arg0: i32) -> (i32, i32, i32) {
    %c0_i32 = arith.constant 0 : i32
    %c0_i32_0 = arith.constant 0 : i32
    %c0_i32_1 = arith.constant 0 : i32
    return %arg0, %c0_i32, %c0_i32_0 : i32, i32, i32
  }
  func.func @transform_1(%arg0: i32) -> (i32, i32, i32) {
    %c0_i32 = arith.constant 0 : i32
    %c0_i32_0 = arith.constant 0 : i32
    %c0_i32_1 = arith.constant 0 : i32
    %c0_i32_2 = arith.constant 0 : i32
    return %c0_i32, %c0_i32_0, %c0_i32_1 : i32, i32, i32
  }
  func.func @transform_2(%arg0: i32) -> (i32, i32, i32) {
    %c0_i32 = arith.constant 0 : i32
    %c0_i32_0 = arith.constant 0 : i32
    %c0_i32_1 = arith.constant 0 : i32
    return %arg0, %c0_i32, %c0_i32_0 : i32, i32, i32
  }
}

</mosaic_0001>

<bundles_post_ra>
// kernel: tpu_custom_call.1
= control target key start
LH: loop header
LB: loop body
LE: loop exit
PB: predicated region body
PF: predicated region fallthrough
CT: control target
= control target key end

     0   :  { %7 = vsyncpa [#allocation3], 0  ;;  %s3283_s0 = inlined_call_operand.hbm [shape: bf16[2,16,1280], index: 0, kind: input, shape index: {}]   ;;  %s3284_s1 = inlined_call_operand.hbm [shape: bf16[3,8,48], index: 1, kind: input, shape index: {}]   ;;  %s3285_s2 = inlined_call_operand.hbm [shape: f32[2,8,1152], index: 2, kind: output, shape index: {}]  }
   0x1   :  { %8 = vsyncpa [#allocation6], 0 }
   0x2   :  { %9 = vsyncpa [#allocation4], 0  ;;  %s2333_s9 = smov [#allocation2]  }
   0x3   :  { %s15_s10 = sshll.u32 %s2333_s9, 4  ;;  %s16_s10 = int_to_ptr.vmem [resolvable:$true] %s15_s10 }
   0x4   :  { %s2275_s11 = scalar_lea.vmem %s16_s10, 2560  ;;  %p2280_p1 = scmp.lt.s32.totalorder %s16_s10, %s16_s10 }
   0x5   :  { %p2276_p0 = scmp.ne.s32.totalorder %s16_s10, %s2275_s11  ;;  %p2281_p2 = scmp.lt.s32.totalorder %s2275_s11, %s2275_s11 }
   0x7   :  { %p2282_p3 = por %p2281_p2, %p2280_p1 }
   0x9   :  { %p2283_p4 = pnand %p2282_p3, %p2276_p0 }
   0xb   :  { %2286 = shalt.err (!%p2283_p4)
}
   0xc   :  { %s2334_s12 = smov 640   ;;  %s2335_s13 = smov 40  }
   0xd   :  { %21 = dma.hbm_to_vmem [thread:$0]  %s3283_s0, 2560, %s16_s10, [#allocation3], %s2334_s12, %s2334_s12, %s2335_s13  }
   0xe   :  { %s2336_s16 = smov [#allocation5]  }
   0xf   :  { %s27_s17 = sshll.u32 %s2336_s16, 4  ;;  %s28_s17 = int_to_ptr.vmem [resolvable:$true] %s27_s17 }
  0x10   :  { %s2295_s18 = scalar_lea.vmem %s28_s17, 192  ;;  %p2300_p6 = scmp.lt.s32.totalorder %s28_s17, %s28_s17 }
  0x11   :  { %p2296_p5 = scmp.ne.s32.totalorder %s28_s17, %s2295_s18  ;;  %p2301_p7 = scmp.lt.s32.totalorder %s2295_s18, %s2295_s18 }
  0x13   :  { %p2302_p8 = por %p2301_p7, %p2300_p6 }
  0x15   :  { %p2303_p9 = pnand %p2302_p8, %p2296_p5 }
  0x17   :  { %2306 = shalt.err (!%p2303_p9)
}
  0x18   :  { %s2337_s19 = smov 64   ;;  %s2338_s20 = smov 4  }
  0x19   :  { %33 = dma.hbm_to_vmem [thread:$0]  %s3284_s1, 192, %s28_s17, [#allocation6], %s2337_s19, %s2337_s19, %s2338_s20  }
  0x1a   :  { %2327 = dma.done.wait [#allocation3], 2560  }
  0x1b   :  { %2328 = vsyncadd [#allocation3], 4294964736 }
  0x1c   :  { %2329 = dma.done.wait [#allocation6], 192  }
  0x1d   :  { %2330 = vsyncadd [#allocation6], 4294967104  ;;  %v2370_v0 = vld [vmem:[#allocation2 + $0xc] ss:$40 sps:$4 sm:$0xff]   ;;  %s2339_s0 = smov 126   ;;  %s2340_s1 = smov 127  }
  0x1e   :  { %v2372_v1 = vld [vmem:[#allocation2 + $0x4] ss:$40 sps:$4 sm:$0xff]   ;;  %145 = vrot.lane.b32.xlu1 %v2370_v0, %s2339_s0  ;;  %v2376_v2 = vld [vmem:[#allocation2 + $0x10] ss:$40 sps:$4 sm:$0xff]   ;;  %v2384_v4 = vld [vmem:[#allocation2] ss:$40 sps:$4 sm:$0xff]  }
  0x1f   :  { %141 = vrot.lane.b32.xlu0 %v2372_v1, %s2339_s0  ;;  %v2380_v3 = vld [vmem:[#allocation2 + $0x8] ss:$40 sps:$4 sm:$0xff]   ;;  %v2388_v5 = vld [vmem:[#allocation2 + $0x14] ss:$40 sps:$4 sm:$0xff]   ;;  %v2408_v7 = vld [vmem:[#allocation2 + $0x18] ss:$40 sps:$4 sm:$0xff]  }
  0x20   :  { %v2404_v6 = vld [vmem:[#allocation2 + $0x1c] ss:$40 sps:$4 sm:$0xff]   ;;  %3308 = vst [vmem:[#allocation12_spill] sm:$0xff] %v2408_v7  ;;  %v2416_v9 = vld [vmem:[#allocation2 + $0x20] ss:$40 sps:$4 sm:$0xff]   ;;  %s2341_s23 = smov 94  }
  0x21   :  { %3307 = vst [vmem:[#allocation11_spill] sm:$0xff] %v2404_v6  ;;  %v2412_v8 = vld [vmem:[#allocation2 + $0x24] ss:$40 sps:$4 sm:$0xff]   ;;  %3309 = vst [vmem:[#allocation13_spill] sm:$0xff] %v2416_v9  ;;  %v2444_v10 = vld [vmem:[#allocation2 + $0x58] ss:$40 sps:$4 sm:$0xff]  }
  0x22   :  { %147 = vrot.lane.b32.xlu1 %v2376_v2, %s2339_s0  ;;  %v2450_v11 = vld [vmem:[#allocation2 + $0x50] ss:$40 sps:$4 sm:$0xff]   ;;  %v2454_v12 = vld [vmem:[#allocation2 + $0x54] ss:$40 sps:$4 sm:$0xff]   ;;  %v2472_v14 = vld [vmem:[#allocation2 + $0x64] ss:$40 sps:$4 sm:$0xff]  }
  0x23   :  { %143 = vrot.lane.b32.xlu0 %v2380_v3, %s2339_s0  ;;  %3310 = vst [vmem:[#allocation14_spill] sm:$0xff] %v2454_v12  ;;  %v2460_v13 = vld [vmem:[#allocation2 + $0x5c] ss:$40 sps:$4 sm:$0xff]   ;;  %v2476_v15 = vld [vmem:[#allocation2 + $0x60] ss:$40 sps:$4 sm:$0xff]   ;;  %vm159_vm0 = vcmask 1031168  }
  0x24   :  { %v2480_v16 = vld [vmem:[#allocation2 + $0x6c] ss:$40 sps:$4 sm:$0xff]   ;;  %v2484_v17 = vld [vmem:[#allocation2 + $0x68] ss:$40 sps:$4 sm:$0xff]   ;;  %vm120_vm1 = vcmask 1039360   ;;  %v3286_v43 = vmov 0  }
  0x25   :  { %332 = vmatprep.mubr.bf16.mxu0 %v3286_v43  ;;  %373 = vmatprep.mubr.bf16.mxu1 %v3286_v43  ;;  %v2592_v56 = vld [vmem:[#allocation2 + $0x74] ss:$40 sps:$4 sm:$0xff]   ;;  %v2604_v59 = vld [vmem:[#allocation2 + $0x70] ss:$40 sps:$4 sm:$0xff]   ;;  %s2343_s24 = smov 60   ;;  %vm241_vm2 = vcmask 769024  }
  0x26   :  { %139 = vrot.lane.b32.xlu1 %v2384_v4, %s2339_s0  ;;  %vm296_vm3 = vcmask 392192   ;;  %vm2345_vm4 = vmmov 0   ;;  %vm773_vm5 = vcmask 490496   ;;  %s2346_s25 = smov [#allocation7]  }
  0x27   :  { %149 = vrot.lane.b32.xlu0 %v2388_v5, %s2339_s0  ;;  %s2065_s26 = sshll.u32 %s2346_s25, 4  ;;  %s2066_s26 = int_to_ptr.vmem [resolvable:$true] %s2065_s26 }
  0x28   :  { %s2307_s27 = scalar_lea.vmem %s2066_s26, 2304  ;;  %p2312_p11 = scmp.lt.s32.totalorder %s2066_s26, %s2066_s26 }
  0x29   :  { %p2308_p10 = scmp.ne.s32.totalorder %s2066_s26, %s2307_s27  ;;  %p2313_p12 = scmp.lt.s32.totalorder %s2307_s27, %s2307_s27 }
  0x2a   :  { %104 = vrot.lane.b32.xlu1 %v2380_v3, %s2340_s1 }
  0x2b   :  { %102 = vrot.lane.b32.xlu0 %v2372_v1, %s2340_s1  ;;  %p2314_p13 = por %p2313_p12, %p2312_p11 }
  0x2d   :  { %p2315_p0 = pnand %p2314_p13, %p2308_p10 }
  0x2e   :  { %108 = vrot.lane.b32.xlu1 %v2376_v2, %s2340_s1 }
  0x2f   :  { %106 = vrot.lane.b32.xlu0 %v2370_v0, %s2340_s1 }
  0x32   :  { %100 = vrot.lane.b32.xlu1 %v2384_v4, %s2340_s1 }
  0x33   :  { %110 = vrot.lane.b32.xlu0 %v2388_v5, %s2340_s1 }
  0x36   :  { %153 = vrot.lane.b32.xlu1 %v2404_v6, %s2339_s0 }
  0x37   :  { %151 = vrot.lane.b32.xlu0 %v2408_v7, %s2339_s0 }
  0x3a   :  { %157 = vrot.lane.b32.xlu1 %v2412_v8, %s2339_s0 }
  0x3b   :  { %155 = vrot.lane.b32.xlu0 %v2416_v9, %s2339_s0 }
  0x3e   :  { %114 = vrot.lane.b32.xlu1 %v2404_v6, %s2340_s1 }
  0x3f   :  { %112 = vrot.lane.b32.xlu0 %v2408_v7, %s2340_s1 }
  0x42   :  { %118 = vrot.lane.b32.xlu1 %v2412_v8, %s2340_s1 }
  0x43   :  { %116 = vrot.lane.b32.xlu0 %v2416_v9, %s2340_s1 }
  0x46   :  { %185 = vrot.lane.b32.xlu1 %v2380_v3, %s2341_s23 }
  0x47   :  { %183 = vrot.lane.b32.xlu0 %v2372_v1, %s2341_s23 }
  0x4a   :  { %189 = vrot.lane.b32.xlu1 %v2376_v2, %s2341_s23 }
  0x4b   :  { %187 = vrot.lane.b32.xlu0 %v2370_v0, %s2341_s23 }
  0x4e   :  { %191 = vrot.lane.b32.xlu1 %v2388_v5, %s2341_s23 }
  0x4f   :  { %181 = vrot.lane.b32.xlu0 %v2384_v4, %s2341_s23 }
  0x52   :  { %195 = vrot.lane.b32.xlu1 %v2404_v6, %s2341_s23 }
  0x53   :  { %193 = vrot.lane.b32.xlu0 %v2408_v7, %s2341_s23 }
  0x56   :  { %1155 = vrot.lane.b32.xlu1 %v2444_v10, %s2339_s0 }
  0x57   :  { %197 = vrot.lane.b32.xlu0 %v2416_v9, %s2341_s23 }
  0x5a   :  { %1151 = vrot.lane.b32.xlu1 %v2450_v11, %s2339_s0 }
  0x5b   :  { %1153 = vrot.lane.b32.xlu0 %v2454_v12, %s2339_s0 }
  0x5e   :  { %1115 = vrot.lane.b32.xlu1 %v2454_v12, %s2340_s1 }
  0x5f   :  { %1157 = vrot.lane.b32.xlu0 %v2460_v13, %s2339_s0 }
  0x62   :  { %1119 = vrot.lane.b32.xlu1 %v2460_v13, %s2340_s1 }
  0x63   :  { %1117 = vrot.lane.b32.xlu0 %v2444_v10, %s2340_s1 }
  0x66   :  { %199 = vrot.lane.b32.xlu1 %v2412_v8, %s2341_s23 }
  0x67   :  { %1113 = vrot.lane.b32.xlu0 %v2450_v11, %s2340_s1 }
  0x6a   :  { %1161 = vrot.lane.b32.xlu1 %v2472_v14, %s2339_s0 }
  0x6b   :  { %1159 = vrot.lane.b32.xlu0 %v2476_v15, %s2339_s0 }
  0x6e   :  { %1165 = vrot.lane.b32.xlu1 %v2480_v16, %s2339_s0 }
  0x6f   :  { %1163 = vrot.lane.b32.xlu0 %v2484_v17, %s2339_s0 }
  0x72   :  { %1123 = vrot.lane.b32.xlu1 %v2472_v14, %s2340_s1 }
  0x73   :  { %1121 = vrot.lane.b32.xlu0 %v2476_v15, %s2340_s1 }
  0x90   :  { %v146_v18 = vpop.permute.xlu1 %145 }
  0x91   :  { %v142_v20 = vpop.permute.xlu0 %141 }
  0x94   :  { %v148_v19 = vpop.permute.xlu1 %147 }
  0x95   :  { %v144_v23 = vpop.permute.xlu0 %143  ;;  %v2526_v40 = vsel %vm159_vm0, %v146_v18, %v148_v19 }
  0x96   :  { %v2499_v32 = vsel %vm159_vm0, %v144_v23, %v146_v18  ;;  %v2516_v37 = vsel %vm159_vm0, %v142_v20, %v144_v23 }
  0x98   :  { %v140_v21 = vpop.permute.xlu1 %139 }
  0x99   :  { %v150_v25 = vpop.permute.xlu0 %149  ;;  %v2536_v42 = vsel %vm159_vm0, %v140_v21, %v142_v20 }
  0x9a   :  { %v2506_v34 = vsel %vm159_vm0, %v148_v19, %v150_v25 }
  0x9c   :  { %v105_v22 = vpop.permute.xlu1 %104 }
  0x9d   :  { %v103_v28 = vpop.permute.xlu0 %102 }
  0x9e   :  { %v2513_v36 = vsel %vm120_vm1, %v103_v28, %v105_v22 }
  0xa0   :  { %v109_v24 = vpop.permute.xlu1 %108 }
  0xa1   :  { %v107_v30 = vpop.permute.xlu0 %106 }
  0xa2   :  { %v2523_v39 = vsel %vm120_vm1, %v107_v30, %v109_v24  ;;  %v2548_v46 = vsel %vm120_vm1, %v105_v22, %v107_v30 }
  0xa4   :  { %v101_v26 = vpop.permute.xlu1 %100 }
  0xa5   :  { %v111_v35 = vpop.permute.xlu0 %110  ;;  %v2533_v41 = vsel %vm120_vm1, %v101_v26, %v103_v28 }
  0xa6   :  { %v2558_v49 = vsel %vm120_vm1, %v109_v24, %v111_v35 }
  0xa8   :  { %v154_v27 = vpop.permute.xlu1 %153 }
  0xa9   :  { %v152_v38 = vpop.permute.xlu0 %151 }
  0xaa   :  { %v2545_v45 = vsel %vm159_vm0, %v150_v25, %v152_v38  ;;  %v2568_v51 = vsel %vm159_vm0, %v152_v38, %v154_v27 }
  0xac   :  { %v2494_v29 = vpop.permute.xlu1 %157 }
  0xad   :  { %239 = vrot.lane.b32.xlu1 %v2494_v29, %s2341_s23  ;;  %v156_v44 = vpop.permute.xlu0 %155 }
  0xae   :  { %v2555_v48 = vsel %vm159_vm0, %v154_v27, %v156_v44  ;;  %v2579_v54 = vsel %vm159_vm0, %v156_v44, %v2494_v29 }
  0xaf   :  { %3311 = vst [vmem:[#allocation15_spill] sm:$0xff] %v2579_v54 }
  0xb0   :  { %v115_v31 = vpop.permute.xlu1 %114 }
  0xb1   :  { %225 = vrot.lane.b32.xlu1 %v2499_v32, %s2341_s23  ;;  %v113_v47 = vpop.permute.xlu0 %112 }
  0xb2   :  { %v2565_v50 = vsel %vm120_vm1, %v111_v35, %v113_v47  ;;  %v2586_v55 = vsel %vm120_vm1, %v113_v47, %v115_v31 }
  0xb3   :  { %3312 = vst [vmem:[#allocation16_spill] sm:$0xff] %v2586_v55 }
  0xb4   :  { %v2503_v33 = vpop.permute.xlu1 %118 }
  0xb5   :  { %229 = vrot.lane.b32.xlu1 %v2506_v34, %s2341_s23  ;;  %219 = vrot.lane.b32.xlu0 %v2503_v33, %s2341_s23  ;;  %v117_v52 = vpop.permute.xlu0 %116 }
  0xb6   :  { %v2575_v53 = vsel %vm120_vm1, %v115_v31, %v117_v52  ;;  %v2596_v57 = vsel %vm120_vm1, %v117_v52, %v2503_v33 }
  0xb7   :  { %3313 = vst [vmem:[#allocation17_spill] sm:$0xff] %v2596_v57 }
  0xb8   :  { %v2602_v58 = vpop.permute.xlu1 %185 }
  0xb9   :  { %203 = vrot.lane.b32.xlu1 %v2513_v36, %s2341_s23  ;;  %223 = vrot.lane.b32.xlu0 %v2516_v37, %s2341_s23  ;;  %v2616_v61 = vpop.permute.xlu0 %183 }
  0xbc   :  { %v2610_v60 = vpop.permute.xlu1 %189 }
  0xbd   :  { %207 = vrot.lane.b32.xlu1 %v2523_v39, %s2341_s23  ;;  %227 = vrot.lane.b32.xlu0 %v2526_v40, %s2341_s23  ;;  %v2624_v63 = vpop.permute.xlu0 %187 }
  0xc0   :  { %v2622_v62 = vpop.permute.xlu1 %191 }
  0xc1   :  { %201 = vrot.lane.b32.xlu1 %v2533_v41, %s2341_s23  ;;  %221 = vrot.lane.b32.xlu0 %v2536_v42, %s2341_s23  ;;  %v2636_v19 = vpop.permute.xlu0 %181 }
  0xc4   :  { %v2630_v18 = vpop.permute.xlu1 %195 }
  0xc5   :  { %231 = vrot.lane.b32.xlu1 %v2545_v45, %s2341_s23  ;;  %205 = vrot.lane.b32.xlu0 %v2548_v46, %s2341_s23  ;;  %v2642_v21 = vpop.permute.xlu0 %193 }
  0xc8   :  { %v1156_v20 = vpop.permute.xlu1 %1155 }
  0xc9   :  { %235 = vrot.lane.b32.xlu1 %v2555_v48, %s2341_s23  ;;  %209 = vrot.lane.b32.xlu0 %v2558_v49, %s2341_s23  ;;  %v2652_v23 = vpop.permute.xlu0 %197 }
  0xcc   :  { %v1152_v22 = vpop.permute.xlu1 %1151 }
  0xcd   :  { %211 = vrot.lane.b32.xlu1 %v2565_v50, %s2341_s23  ;;  %233 = vrot.lane.b32.xlu0 %v2568_v51, %s2341_s23  ;;  %v1154_v25 = vpop.permute.xlu0 %1153 }
  0xce   :  { %v2683_v44 = vsel %vm159_vm0, %v1154_v25, %v1156_v20 }
  0xd0   :  { %v1116_v24 = vpop.permute.xlu1 %1115 }
  0xd1   :  { %215 = vrot.lane.b32.xlu1 %v2575_v53, %s2341_s23  ;;  %237 = vrot.lane.b32.xlu0 %v2579_v54, %s2341_s23  ;;  %v1158_v27 = vpop.permute.xlu0 %1157 }
  0xd4   :  { %v1120_v26 = vpop.permute.xlu1 %1119 }
  0xd5   :  { %1127 = vrot.lane.b32.xlu1 %v2480_v16, %s2340_s1  ;;  %213 = vrot.lane.b32.xlu0 %v2586_v55, %s2341_s23  ;;  %v1118_v30 = vpop.permute.xlu0 %1117 }
  0xd6   :  { %v2696_v43 = vsel %vm120_vm1, %v1116_v24, %v1118_v30 }
  0xd7   :  { %3314 = vst [vmem:[#allocation18_spill] sm:$0xff] %v2696_v43 }
  0xd8   :  { %v2666_v28 = vpop.permute.xlu1 %199 }
  0xd9   :  { %1169 = vrot.lane.b32.xlu1 %v2592_v56, %s2339_s0  ;;  %217 = vrot.lane.b32.xlu0 %v2596_v57, %s2341_s23  ;;  %v1114_v35 = vpop.permute.xlu0 %1113 }
  0xdc   :  { %v1162_v31 = vpop.permute.xlu1 %1161 }
  0xdd   :  { %1131 = vrot.lane.b32.xlu1 %v2592_v56, %s2340_s1  ;;  %1125 = vrot.lane.b32.xlu0 %v2484_v17, %s2340_s1  ;;  %v1160_v47 = vpop.permute.xlu0 %1159 }
  0xe0   :  { %v2680_v38 = vpop.permute.xlu1 %1165 }
  0xe1   :  { %757 = vrot.lane.b32.xlu1 %v2499_v32, %s2343_s24  ;;  %1167 = vrot.lane.b32.xlu0 %v2604_v59, %s2339_s0 }
  0xe4   :  { %v2693_v52 = vpop.permute.xlu1 %1123 }
  0xe5   :  { %761 = vrot.lane.b32.xlu1 %v2506_v34, %s2343_s24  ;;  %1129 = vrot.lane.b32.xlu0 %v2604_v59, %s2340_s1 }
  0xe9   :  { %735 = vrot.lane.b32.xlu1 %v2513_v36, %s2343_s24  ;;  %755 = vrot.lane.b32.xlu0 %v2516_v37, %s2343_s24 }
  0xed   :  { %739 = vrot.lane.b32.xlu1 %v2523_v39, %s2343_s24  ;;  %759 = vrot.lane.b32.xlu0 %v2526_v40, %s2343_s24 }
  0xf1   :  { %733 = vrot.lane.b32.xlu1 %v2533_v41, %s2343_s24  ;;  %753 = vrot.lane.b32.xlu0 %v2536_v42, %s2343_s24 }
  0xf5   :  { %717 = vrot.lane.b32.xlu1 %v2380_v3, %s2343_s24  ;;  %737 = vrot.lane.b32.xlu0 %v2548_v46, %s2343_s24 }
  0xf9   :  { %721 = vrot.lane.b32.xlu1 %v2376_v2, %s2343_s24  ;;  %741 = vrot.lane.b32.xlu0 %v2558_v49, %s2343_s24 }
  0xfd   :  { %763 = vrot.lane.b32.xlu1 %v2545_v45, %s2343_s24  ;;  %715 = vrot.lane.b32.xlu0 %v2372_v1, %s2343_s24 }
 0x101   :  { %767 = vrot.lane.b32.xlu1 %v2555_v48, %s2343_s24  ;;  %719 = vrot.lane.b32.xlu0 %v2370_v0, %s2343_s24 }
 0x105   :  { %743 = vrot.lane.b32.xlu1 %v2565_v50, %s2343_s24  ;;  %713 = vrot.lane.b32.xlu0 %v2384_v4, %s2343_s24 }
 0x109   :  { %747 = vrot.lane.b32.xlu1 %v2575_v53, %s2343_s24  ;;  %765 = vrot.lane.b32.xlu0 %v2568_v51, %s2343_s24 }
 0x10d   :  { %723 = vrot.lane.b32.xlu1 %v2388_v5, %s2343_s24  ;;  %769 = vrot.lane.b32.xlu0 %v2579_v54, %s2343_s24  ;;  %v2705_v54 = vsel %vm159_vm0, %v1156_v20, %v1158_v27 }
 0x111   :  { %727 = vrot.lane.b32.xlu1 %v2404_v6, %s2343_s24  ;;  %745 = vrot.lane.b32.xlu0 %v2586_v55, %s2343_s24  ;;  %v1164_v6 = vpop.permute.xlu0 %1163  ;;  %v2712_v55 = vsel %vm159_vm0, %v1152_v22, %v1154_v25  ;;  %v2730_v25 = vsel %vm120_vm1, %v1114_v35, %v1116_v24 }
 0x112   :  { %3315 = vst [vmem:[#allocation19_spill] sm:$0xff] %v2712_v55  ;;  %3317 = vst [vmem:[#allocation21_spill] sm:$0xff] %v2730_v25 }
 0x115   :  { %749 = vrot.lane.b32.xlu0 %v2596_v57, %s2343_s24  ;;  %1233 = vrot.lane.b32.xlu1 %v2683_v44, %s2341_s23 }
 0x119   :  { %725 = vrot.lane.b32.xlu0 %v2408_v7, %s2343_s24  ;;  %771 = vrot.lane.b32.xlu1 %v2494_v29, %s2343_s24  ;;  %v1122_v29 = vpop.permute.xlu0 %1121 }
 0x11d   :  { %729 = vrot.lane.b32.xlu0 %v2416_v9, %s2343_s24  ;;  %1213 = vrot.lane.b32.xlu1 %v2696_v43, %s2341_s23  ;;  %v2723_v43 = vsel %vm120_vm1, %v1118_v30, %v1120_v26 }
 0x11e   :  { %3316 = vst [vmem:[#allocation20_spill] sm:$0xff] %v2723_v43 }
 0x11f   :  { %v2702_v57 = vpop.permute.xlu1 %239 }
 0x121   :  { %1235 = vrot.lane.b32.xlu0 %v2705_v54, %s2341_s23  ;;  %751 = vrot.lane.b32.xlu1 %v2503_v33, %s2343_s24 }
 0x123   :  { %v226_v7 = vpop.permute.xlu1 %225 }
 0x125   :  { %1231 = vrot.lane.b32.xlu0 %v2712_v55, %s2341_s23  ;;  %1193 = vrot.lane.b32.xlu1 %v2454_v12, %s2341_s23  ;;  %v2733_v12 = vsel %vm159_vm0, %v1158_v27, %v1160_v47 }
 0x126   :  { %3318 = vst [vmem:[#allocation22_spill] sm:$0xff] %v2733_v12 }
 0x127   :  { %v2718_v9 = vpop.permute.xlu0 %219  ;;  %v2720_v20 = vpop.permute.xlu1 %229 }
 0x129   :  { %731 = vrot.lane.b32.xlu1 %v2412_v8, %s2343_s24  ;;  %1215 = vrot.lane.b32.xlu0 %v2723_v43, %s2341_s23  ;;  %v2741_v43 = vsel %vm159_vm0, %v1162_v31, %v1164_v6 }
 0x12a   :  { %3319 = vst [vmem:[#allocation23_spill] sm:$0xff] %v2741_v43 }
 0x12b   :  { %v224_v33 = vpop.permute.xlu0 %223  ;;  %v204_v22 = vpop.permute.xlu1 %203 }
 0x12c   :  { %v261_v55 = vsel %vm241_vm2, %v224_v33, %v226_v7 }
 0x12d   :  { %1237 = vrot.lane.b32.xlu1 %v2733_v12, %s2341_s23  ;;  %1211 = vrot.lane.b32.xlu0 %v2730_v25, %s2341_s23  ;;  %v2751_v12 = vsel %vm120_vm1, %v1120_v26, %v1122_v29 }
 0x12e   :  { %310 = vmatprep.subr.bf16.mxu0 %v261_v55 }
 0x12f   :  { %v228_v8 = vpop.permute.xlu0 %227  ;;  %v208_v30 = vpop.permute.xlu1 %207 }
 0x130   :  { %v263_v24 = vsel %vm241_vm2, %v228_v8, %v2720_v20  ;;  %v262_v27 = vsel %vm241_vm2, %v226_v7, %v228_v8 }
 0x131   :  { %1195 = vrot.lane.b32.xlu0 %v2444_v10, %s2341_s23  ;;  %1241 = vrot.lane.b32.xlu1 %v2741_v43, %s2341_s23  ;;  %v2759_v43 = vsel %vm159_vm0, %v1160_v47, %v1162_v31  ;;  %v2770_v31 = vsel %vm159_vm0, %v1164_v6, %v2680_v38 }
 0x132   :  { %351 = vmatprep.subr.bf16.mxu1 %v263_v24 }
 0x133   :  { %352 = vmatpush1.bf16.msra.mxu1 %v262_v27  ;;  %v222_v35 = vpop.permute.xlu0 %221  ;;  %v202_v55 = vpop.permute.xlu1 %201 }
 0x134   :  { %v260_v25 = vsel %vm241_vm2, %v222_v35, %v224_v33  ;;  %v251_v26 = vsel %vm241_vm2, %v202_v55, %v204_v22  ;;  %v243_v33 = vsel %vm241_vm2, %v2616_v61, %v2602_v58  ;;  %v245_v55 = vsel %vm241_vm2, %v2624_v63, %v2610_v60 }
 0x135   :  { %1191 = vrot.lane.b32.xlu0 %v2450_v11, %s2341_s23  ;;  %1217 = vrot.lane.b32.xlu1 %v2751_v12, %s2341_s23 }
 0x136   :  { %311 = vmatpush1.bf16.msra.mxu0 %v260_v25 }
 0x137   :  { %v206_v7 = vpop.permute.xlu0 %205  ;;  %v232_v8 = vpop.permute.xlu1 %231 }
 0x138   :  { %v252_v24 = vsel %vm241_vm2, %v204_v22, %v206_v7  ;;  %v242_v22 = vsel %vm241_vm2, %v2636_v19, %v2616_v61  ;;  %v253_v35 = vsel %vm241_vm2, %v206_v7, %v208_v30  ;;  %v244_v19 = vsel %vm241_vm2, %v2602_v58, %v2624_v63 }
 0x139   :  { %1239 = vrot.lane.b32.xlu0 %v2759_v43, %s2341_s23  ;;  %312 = vmatprep.subr.bf16.mxu0 %v252_v24 }
 0x13a   :  { %313 = vmatpush1.bf16.msra.mxu0 %v251_v26  ;;  %v2782_v26 = vld [vmem:[#allocation5 + $0x4] sm:$0xf] }
 0x13b   :  { %v210_v27 = vpop.permute.xlu0 %209  ;;  %314 = vmatprep.subr.bf16.mxu0 %v243_v33  ;;  %v236_v25 = vpop.permute.xlu1 %235  ;;  %v2786_v33 = vsel %vm120_vm1, %v1122_v29, %v2693_v52 }
 0x13c   :  { %v254_v47 = vsel %vm241_vm2, %v208_v30, %v210_v27  ;;  %v264_v30 = vsel %vm241_vm2, %v2720_v20, %v232_v8 }
 0x13d   :  { %1243 = vrot.lane.b32.xlu0 %v2770_v31, %s2341_s23  ;;  %353 = vmatprep.subr.bf16.mxu1 %v254_v47  ;;  %v3320_v47 = vmov 0  }
 0x13e   :  { %315 = vmatpush1.bf16.msra.mxu0 %v242_v22  ;;  %354 = vmatpush1.bf16.msra.mxu1 %v253_v35 }
 0x13f   :  { %v234_v6 = vpop.permute.xlu0 %233  ;;  %355 = vmatprep.subr.bf16.mxu1 %v245_v55  ;;  %v212_v24 = vpop.permute.xlu1 %211  ;;  %v247_v55 = vsel %vm241_vm2, %v2622_v62, %v2642_v21 }
 0x140   :  { %v265_v61 = vsel %vm241_vm2, %v232_v8, %v234_v6  ;;  %v266_v58 = vsel %vm241_vm2, %v234_v6, %v236_v25  ;;  %v255_v8 = vsel %vm241_vm2, %v210_v27, %v212_v24  ;;  %v246_v6 = vsel %vm241_vm2, %v2610_v60, %v2622_v62 }
 0x141   :  { %1219 = vrot.lane.b32.xlu0 %v2786_v33, %s2341_s23  ;;  %392 = vmatprep.subr.bf16.mxu0 %v265_v61  ;;  %v249_v27 = vsel %vm241_vm2, %v2630_v18, %v2652_v23  ;;  %v248_v62 = vsel %vm241_vm2, %v2642_v21, %v2630_v18 }
 0x142   :  { %2088 = vmatmul.mubr.msk.bf16.vlgmr.msra.gmra.mxu0 %vm296_vm3, %v2782_v26  ;;  %356 = vmatpush1.bf16.msra.mxu1 %v244_v19 }
 0x143   :  { %393 = vmatpush1.bf16.msra.mxu0 %v264_v30  ;;  %v238_v29 = vpop.permute.xlu0 %237  ;;  %v216_v7 = vpop.permute.xlu1 %215  ;;  %414 = vmatprep.mubr.bf16.mxu0 %v3320_v47 }
 0x144   :  { %v267_v22 = vsel %vm241_vm2, %v236_v25, %v238_v29 }
 0x145   :  { %433 = vmatprep.subr.bf16.mxu1 %v267_v22  ;;  %2089 = vmatmul.mubr.msk.bf16.vlgmr.msra.gmra.mxu1 %vm296_vm3, %v2782_v26 }
 0x146   :  { %434 = vmatpush1.bf16.msra.mxu1 %v266_v58  ;;  %455 = vmatprep.mubr.bf16.mxu1 %v3320_v47  ;;  %v2344_v58 = vmov 0.0  }
 0x147   :  { %v214_v63 = vpop.permute.xlu0 %213  ;;  %v2804_v35 = vpop.permute.xlu1 %1127 }
 0x148   :  { %v256_v20 = vsel %vm241_vm2, %v212_v24, %v214_v63  ;;  %v257_v30 = vsel %vm241_vm2, %v214_v63, %v216_v7 }
 0x149   :  { %394 = vmatprep.subr.bf16.mxu0 %v256_v20 }
 0x14a   :  { %395 = vmatpush1.bf16.msra.mxu0 %v255_v8  ;;  %v3328_v8 = vld [vmem:[#allocation20_spill] sm:$0xff] }
 0x14b   :  { %v218_v61 = vpop.permute.xlu0 %217  ;;  %396 = vmatprep.subr.bf16.mxu0 %v247_v55  ;;  %v2811_v19 = vpop.permute.xlu1 %1169 }
 0x14c   :  { %v258_v25 = vsel %vm241_vm2, %v216_v7, %v218_v61 }
 0x14d   :  { %435 = vmatprep.subr.bf16.mxu1 %v258_v25 }
 0x14e   :  { %397 = vmatpush1.bf16.msra.mxu0 %v246_v6  ;;  %436 = vmatpush1.bf16.msra.mxu1 %v257_v30 }
 0x14f   :  { %v1126_v24 = vpop.permute.xlu0 %1125  ;;  %437 = vmatprep.subr.bf16.mxu1 %v249_v27  ;;  %v2821_v22 = vpop.permute.xlu1 %1131  ;;  %2152 = vmatprep.subr.bf16.mxu0 %v2344_v58 }
 0x150   :  { %v2826_v20 = vsel %vm120_vm1, %v2693_v52, %v1126_v24  ;;  %v2830_v60 = vsel %vm120_vm1, %v1126_v24, %v2804_v35  ;;  %v268_v52 = vsel %vm241_vm2, %v238_v29, %v2702_v57  ;;  %v259_v57 = vsel %vm241_vm2, %v218_v61, %v2718_v9  ;;  %v3329_v61 = vld [vmem:[#allocation13_spill] sm:$0xff] }
 0x151   :  { %1221 = vrot.lane.b32.xlu1 %v2826_v20, %s2341_s23  ;;  %1223 = vrot.lane.b32.xlu0 %v2830_v60, %s2341_s23  ;;  %v250_v9 = vsel %vm241_vm2, %v2652_v23, %v2666_v28  ;;  %v3330_v24 = vld [vmem:[#allocation21_spill] sm:$0xff] }
 0x152   :  { %2090 = vmatmul.mubr.msk.bf16.vlgmr.msra.gmra.mxu0 %vm296_vm3, %v2782_v26  ;;  %438 = vmatpush1.bf16.msra.mxu1 %v248_v62  ;;  %v3331_v62 = vld [vmem:[#allocation14_spill] sm:$0xff] }
 0x153   :  { %2153 = vmatpush3.bf16.msra.mxu0 %v268_v52  ;;  %v1168_v7 = vpop.permute.xlu0 %1167  ;;  %517 = vmatprep.subr.bf16.mxu1 %v2516_v37  ;;  %v2844_v63 = vpop.permute.xlu1 %757 }
 0x154   :  { %2154 = vmatprep.subr.bf16.mxu0 %v2344_v58  ;;  %2158 = vmatprep.mubr.msk.bf16.mxu0 %vm2345_vm4, %v2344_v58  ;;  %v2881_v29 = vsel %vm159_vm0, %v2680_v38, %v1168_v7 }
 0x155   :  { %1197 = vrot.lane.b32.xlu1 %v2460_v13, %s2341_s23  ;;  %1199 = vrot.lane.b32.xlu0 %v2476_v15, %s2341_s23 }
 0x156   :  { %2091 = vmatmul.mubr.msk.bf16.vlgmr.msra.gmra.mxu1 %vm296_vm3, %v2782_v26 }
 0x157   :  { %2155 = vmatpush3.bf16.msra.mxu0 %v259_v57  ;;  %518 = vmatpush1.bf16.msra.mxu1 %v2536_v42  ;;  %v1130_v37 = vpop.permute.xlu0 %1129  ;;  %v2858_v18 = vpop.permute.xlu1 %761  ;;  %v2871_v42 = vsel %vm159_vm0, %v1168_v7, %v2811_v19 }
 0x158   :  { %519 = vmatprep.subr.bf16.mxu1 %v2513_v36  ;;  %2156 = vmatprep.subr.bf16.mxu0 %v2344_v58 }
 0x159   :  { %1201 = vrot.lane.b32.xlu1 %v2472_v14, %s2341_s23  ;;  %1203 = vrot.lane.b32.xlu0 %v2484_v17, %s2341_s23 }
 0x15a   :  { %539 = vmatprep.mubr.bf16.mxu1 %v3320_v47 }
 0x15b   :  { %2157 = vmatpush3.bf16.msra.mxu0 %v250_v9  ;;  %520 = vmatpush1.bf16.msra.mxu1 %v2533_v41  ;;  %v2875_v36 = vpop.permute.xlu0 %755  ;;  %v2877_v21 = vpop.permute.xlu1 %735 }
 0x15c   :  { %558 = vmatprep.subr.bf16.mxu0 %v2526_v40  ;;  %521 = vmatprep.subr.bf16.mxu1 %v2372_v1  ;;  %v2897_v40 = vld [vmem:[#allocation5] sm:$0xf]  ;;  %v2901_v1 = vsel %vm120_vm1, %v2804_v35, %v1130_v37  ;;  %v793_v38 = vsel %vm773_vm5, %v2875_v36, %v2844_v63  ;;  %v3327_v35 = vld [vmem:[#allocation18_spill] sm:$0xff] }
 0x15d   :  { %1245 = vrot.lane.b32.xlu1 %v2881_v29, %s2341_s23  ;;  %1247 = vrot.lane.b32.xlu0 %v2871_v42, %s2341_s23 }
 0x15e   :  { %2159 = vmatmul.mubr.msk.bf16.vlgmr.msra.gmra.mxu0 %vm296_vm3, %v2782_v26 }
 0x15f   :  { %522 = vmatpush1.bf16.msra.mxu1 %v2384_v4  ;;  %559 = vmatpush1.bf16.msra.mxu0 %v2499_v32  ;;  %v2893_v41 = vpop.permute.xlu0 %759  ;;  %v2895_v23 = vpop.permute.xlu1 %739  ;;  %v2911_v4 = vsel %vm120_vm1, %v1130_v37, %v2821_v22 }
 0x160   :  { %560 = vmatprep.subr.bf16.mxu0 %v2523_v39  ;;  %599 = vmatprep.subr.bf16.mxu1 %v2545_v45  ;;  %v795_v30 = vsel %vm773_vm5, %v2893_v41, %v2858_v18  ;;  %v794_v7 = vsel %vm773_vm5, %v2844_v63, %v2893_v41 }
 0x161   :  { %1225 = vrot.lane.b32.xlu0 %v2901_v1, %s2341_s23  ;;  %1249 = vrot.lane.b32.xlu1 %v2811_v19, %s2341_s23 }
 0x162   :  { %2093 = vmatmul.mubr.msk.bf16.vlgmr.msra.gmra.mxu1 %vm296_vm3, %v2897_v40  ;;  %580 = vmatprep.mubr.bf16.mxu0 %v3320_v47 }
 0x163   :  { %561 = vmatpush1.bf16.msra.mxu0 %v2548_v46  ;;  %600 = vmatpush1.bf16.msra.mxu1 %v2506_v34  ;;  %v754_v32 = vpop.permute.xlu0 %753  ;;  %v734_v39 = vpop.permute.xlu1 %733 }
 0x164   :  { %601 = vmatprep.subr.bf16.mxu1 %v2565_v50  ;;  %562 = vmatprep.subr.bf16.mxu0 %v2370_v0  ;;  %v3324_v50 = vld [vmem:[#allocation19_spill] sm:$0xff]  ;;  %v792_v55 = vsel %vm773_vm5, %v754_v32, %v2875_v36  ;;  %v783_v57 = vsel %vm773_vm5, %v734_v39, %v2877_v21 }
 0x165   :  { %1227 = vrot.lane.b32.xlu1 %v2911_v4, %s2341_s23  ;;  %1229 = vrot.lane.b32.xlu0 %v2821_v22, %s2341_s23 }
 0x166   :  { %621 = vmatprep.mubr.bf16.mxu1 %v3320_v47 }
 0x167   :  { %563 = vmatpush1.bf16.msra.mxu0 %v2380_v3  ;;  %602 = vmatpush1.bf16.msra.mxu1 %v2558_v49  ;;  %v2927_v45 = vpop.permute.xlu0 %737  ;;  %v2929_v34 = vpop.permute.xlu1 %717  ;;  %v3323_v49 = vld [vmem:[#allocation11_spill] sm:$0xff] }
 0x168   :  { %640 = vmatprep.subr.bf16.mxu0 %v2555_v48  ;;  %603 = vmatprep.subr.bf16.mxu1 %v2388_v5  ;;  %v3322_v5 = vld [vmem:[#allocation15_spill] sm:$0xff]  ;;  %v784_v6 = vsel %vm773_vm5, %v2877_v21, %v2927_v45  ;;  %v785_v21 = vsel %vm773_vm5, %v2927_v45, %v2895_v23 }
 0x169   :  { %1205 = vrot.lane.b32.xlu1 %v2480_v16, %s2341_s23  ;;  %1207 = vrot.lane.b32.xlu0 %v2604_v59, %s2341_s23 }
 0x16a   :  { %2094 = vmatmul.mubr.msk.bf16.vlgmr.msra.gmra.mxu0 %vm296_vm3, %v2897_v40 }
 0x16b   :  { %604 = vmatpush1.bf16.msra.mxu1 %v2376_v2  ;;  %641 = vmatpush1.bf16.msra.mxu0 %v2568_v51  ;;  %v2941_v0 = vpop.permute.xlu0 %741  ;;  %v2943_v3 = vpop.permute.xlu1 %721  ;;  %v3321_v2 = vld [vmem:[#allocation16_spill] sm:$0xff] }
 0x16c   :  { %642 = vmatprep.subr.bf16.mxu0 %v2575_v53  ;;  %2162 = vmatprep.subr.bf16.mxu1 %v2344_v58  ;;  %v3325_v51 = vld [vmem:[#allocation12_spill] sm:$0xff]  ;;  %v3326_v53 = vld [vmem:[#allocation17_spill] sm:$0xff]  ;;  %v786_v9 = vsel %vm773_vm5, %v2895_v23, %v2941_v0 }
 0x16d   :  { %1209 = vrot.lane.b32.xlu1 %v2592_v56, %s2341_s23  ;;  %1762 = vrot.lane.b32.xlu0 %v2683_v44, %s2343_s24 }
 0x16e   :  { %2095 = vmatmul.mubr.msk.bf16.vlgmr.msra.gmra.mxu1 %vm296_vm3, %v2897_v40  ;;  %662 = vmatprep.mubr.bf16.mxu0 %v3320_v47 }
 0x16f   :  { %643 = vmatpush1.bf16.msra.mxu0 %v3321_v2  ;;  %2163 = vmatpush3.bf16.msra.mxu1 %v3322_v5  ;;  %v716_v46 = vpop.permute.xlu0 %715  ;;  %v764_v48 = vpop.permute.xlu1 %763  ;;  %v3014_v2 = vld [vmem:[#allocation5 + $0x8] sm:$0xf] }
 0x170   :  { %644 = vmatprep.subr.bf16.mxu0 %v3323_v49  ;;  %2164 = vmatprep.subr.bf16.mxu1 %v2344_v58  ;;  %v775_v52 = vsel %vm773_vm5, %v716_v46, %v2929_v34  ;;  %v796_v23 = vsel %vm773_vm5, %v2858_v18, %v764_v48  ;;  %v3333_v49 = vld [vmem:[#allocation23_spill] sm:$0xff] }
 0x171   :  { %1764 = vrot.lane.b32.xlu1 %v2705_v54, %s2343_s24  ;;  %1760 = vrot.lane.b32.xlu0 %v3324_v50, %s2343_s24 }
 0x172   :  { %2168 = vmatprep.mubr.msk.bf16.mxu1 %vm2345_vm4, %v2344_v58 }
 0x173   :  { %645 = vmatpush1.bf16.msra.mxu0 %v3325_v51  ;;  %2165 = vmatpush3.bf16.msra.mxu1 %v3326_v53  ;;  %v720_v28 = vpop.permute.xlu0 %719  ;;  %v768_v26 = vpop.permute.xlu1 %767 }
 0x174   :  { %841 = vmatprep.subr.bf16.mxu0 %v793_v38  ;;  %2166 = vmatprep.subr.bf16.mxu1 %v2344_v58  ;;  %v777_v63 = vsel %vm773_vm5, %v720_v28, %v2943_v3 }
 0x175   :  { %1742 = vrot.lane.b32.xlu1 %v3327_v35, %s2343_s24  ;;  %1744 = vrot.lane.b32.xlu0 %v3328_v8, %s2343_s24 }
 0x176   :  { %2096 = vmatmul.mubr.msk.bf16.vlgmr.msra.gmra.mxu0 %vm296_vm3, %v2897_v40 }
 0x177   :  { %2167 = vmatpush3.bf16.msra.mxu1 %v3329_v61  ;;  %842 = vmatpush1.bf16.msra.mxu0 %v792_v55  ;;  %v714_v25 = vpop.permute.xlu0 %713  ;;  %v744_v27 = vpop.permute.xlu1 %743 }
 0x178   :  { %843 = vmatprep.subr.bf16.mxu0 %v784_v6  ;;  %882 = vmatprep.subr.bf16.mxu1 %v795_v30  ;;  %v774_v32 = vsel %vm773_vm5, %v714_v25, %v716_v46  ;;  %v787_v18 = vsel %vm773_vm5, %v2941_v0, %v744_v27 }
 0x179   :  { %1740 = vrot.lane.b32.xlu1 %v3330_v24, %s2343_s24  ;;  %1722 = vrot.lane.b32.xlu0 %v3331_v62, %s2343_s24 }
 0x17a   :  { %2169 = vmatmul.mubr.msk.bf16.vlgmr.msra.gmra.mxu1 %vm296_vm3, %v2897_v40  ;;  %863 = vmatprep.mubr.bf16.mxu0 %v3320_v47 }
 0x17b   :  { %844 = vmatpush1.bf16.msra.mxu0 %v783_v57  ;;  %883 = vmatpush1.bf16.msra.mxu1 %v794_v7  ;;  %v766_v37 = vpop.permute.xlu0 %765  ;;  %v748_v36 = vpop.permute.xlu1 %747 }
 0x17c   :  { %884 = vmatprep.subr.bf16.mxu1 %v786_v9  ;;  %845 = vmatprep.subr.bf16.mxu0 %v775_v52  ;;  %v797_v40 = vsel %vm773_vm5, %v764_v48, %v766_v37  ;;  %v798_v48 = vsel %vm773_vm5, %v766_v37, %v768_v26 }
 0x17d   :  { %1724 = vrot.lane.b32.xlu1 %v2444_v10, %s2343_s24  ;;  %1720 = vrot.lane.b32.xlu0 %v2450_v11, %s2343_s24  ;;  %v776_v10 = vsel %vm773_vm5, %v2929_v34, %v720_v28  ;;  %v3332_v11 = vld [vmem:[#allocation22_spill] sm:$0xff] }
 0x17e   :  { %904 = vmatprep.mubr.bf16.mxu1 %v3320_v47 }
 0x17f   :  { %846 = vmatpush1.bf16.msra.mxu0 %v774_v32  ;;  %885 = vmatpush1.bf16.msra.mxu1 %v785_v21  ;;  %v770_v41 = vpop.permute.xlu0 %769  ;;  %v724_v39 = vpop.permute.xlu1 %723 }
 0x180   :  { %923 = vmatprep.subr.bf16.mxu0 %v797_v40  ;;  %886 = vmatprep.subr.bf16.mxu1 %v777_v63  ;;  %v799_v5 = vsel %vm773_vm5, %v768_v26, %v770_v41  ;;  %v778_v61 = vsel %vm773_vm5, %v2943_v3, %v724_v39 }
 0x181   :  { %1766 = vrot.lane.b32.xlu1 %v3332_v11, %s2343_s24  ;;  %1768 = vrot.lane.b32.xlu0 %v2759_v43, %s2343_s24 }
 0x182   :  { %2098 = vmatmul.mubr.msk.bf16.vlgmr.msra.gmra.mxu0 %vm296_vm3, %v3014_v2 }
 0x183   :  { %887 = vmatpush1.bf16.msra.mxu1 %v776_v10  ;;  %924 = vmatpush1.bf16.msra.mxu0 %v796_v23  ;;  %v746_v45 = vpop.permute.xlu0 %745  ;;  %v728_v34 = vpop.permute.xlu1 %727 }
 0x184   :  { %964 = vmatprep.subr.bf16.mxu1 %v799_v5  ;;  %v788_v46 = vsel %vm773_vm5, %v744_v27, %v746_v45  ;;  %945 = vmatprep.mubr.bf16.mxu0 %v3320_v47  ;;  %v789_v0 = vsel %vm773_vm5, %v746_v45, %v748_v36 }
 0x185   :  { %1770 = vrot.lane.b32.xlu1 %v3333_v49, %s2343_s24  ;;  %1772 = vrot.lane.b32.xlu0 %v2770_v31, %s2343_s24 }
 0x186   :  { %2099 = vmatmul.mubr.msk.bf16.vlgmr.msra.gmra.mxu1 %vm296_vm3, %v3014_v2  ;;  %925 = vmatprep.subr.bf16.mxu0 %v788_v46 }
 0x187   :  { %926 = vmatpush1.bf16.msra.mxu0 %v787_v18  ;;  %965 = vmatpush1.bf16.msra.mxu1 %v798_v48  ;;  %v750_v51 = vpop.permute.xlu0 %749  ;;  %v1234_v53 = vpop.permute.xlu1 %1233 }
 0x188   :  { %v790_v28 = vsel %vm773_vm5, %v748_v36, %v750_v51  ;;  %986 = vmatprep.mubr.bf16.mxu1 %v3320_v47 }
 0x189   :  { %1746 = vrot.lane.b32.xlu1 %v2751_v12, %s2343_s24  ;;  %1748 = vrot.lane.b32.xlu0 %v2786_v33, %s2343_s24 }
 0x18a   :  { %966 = vmatprep.subr.bf16.mxu1 %v790_v28 }
 0x18b   :  { %967 = vmatpush1.bf16.msra.mxu1 %v789_v0  ;;  %v726_v38 = vpop.permute.xlu0 %725  ;;  %v772_v26 = vpop.permute.xlu1 %771 }
 0x18c   :  { %v779_v55 = vsel %vm773_vm5, %v724_v39, %v726_v38  ;;  %v780_v30 = vsel %vm773_vm5, %v726_v38, %v728_v34  ;;  %v800_v62 = vsel %vm773_vm5, %v770_v41, %v772_v26 }
 0x18d   :  { %1750 = vrot.lane.b32.xlu1 %v2826_v20, %s2343_s24  ;;  %1752 = vrot.lane.b32.xlu0 %v2830_v60, %s2343_s24 }
 0x18e   :  { %927 = vmatprep.subr.bf16.mxu0 %v779_v55 }
 0x18f   :  { %928 = vmatpush1.bf16.msra.mxu0 %v778_v61  ;;  %v730_v25 = vpop.permute.xlu0 %729  ;;  %v1214_v6 = vpop.permute.xlu1 %1213 }
 0x190   :  { %v781_v27 = vsel %vm773_vm5, %v728_v34, %v730_v25  ;;  %2172 = vmatprep.subr.bf16.mxu0 %v2344_v58 }
 0x191   :  { %1726 = vrot.lane.b32.xlu1 %v2460_v13, %s2343_s24  ;;  %1728 = vrot.lane.b32.xlu0 %v2476_v15, %s2343_s24 }
 0x192   :  { %2100 = vmatmul.mubr.msk.bf16.vlgmr.msra.gmra.mxu0 %vm296_vm3, %v3014_v2  ;;  %968 = vmatprep.subr.bf16.mxu1 %v781_v27 }
 0x193   :  { %969 = vmatpush1.bf16.msra.mxu1 %v780_v30  ;;  %2173 = vmatpush3.bf16.msra.mxu0 %v800_v62  ;;  %v1236_v3 = vpop.permute.xlu0 %1235  ;;  %v752_v52 = vpop.permute.xlu1 %751 }
 0x194   :  { %v791_v7 = vsel %vm773_vm5, %v750_v51, %v752_v52  ;;  %2174 = vmatprep.subr.bf16.mxu0 %v2344_v58  ;;  %v1270_v57 = vsel %vm241_vm2, %v1234_v53, %v1236_v3  ;;  %2178 = vmatprep.mubr.msk.bf16.mxu0 %vm2345_vm4, %v2344_v58 }
 0x195   :  { %1730 = vrot.lane.b32.xlu1 %v2472_v14, %s2343_s24  ;;  %1732 = vrot.lane.b32.xlu0 %v2484_v17, %s2343_s24 }
 0x196   :  { %2101 = vmatmul.mubr.msk.bf16.vlgmr.msra.gmra.mxu1 %vm296_vm3, %v3014_v2  ;;  %1318 = vmatprep.subr.bf16.mxu1 %v1270_v57 }
 0x197   :  { %2175 = vmatpush3.bf16.msra.mxu0 %v791_v7  ;;  %v1232_v13 = vpop.permute.xlu0 %1231  ;;  %v1194_v15 = vpop.permute.xlu1 %1193  ;;  %1340 = vmatprep.mubr.bf16.mxu1 %v3320_v47 }
 0x198   :  { %v1269_v37 = vsel %vm241_vm2, %v1232_v13, %v1234_v53  ;;  %2176 = vmatprep.subr.bf16.mxu0 %v2344_v58 }
 0x199   :  { %1774 = vrot.lane.b32.xlu1 %v2881_v29, %s2343_s24  ;;  %1776 = vrot.lane.b32.xlu0 %v2871_v42, %s2343_s24 }
 0x19a   :  { %1319 = vmatpush1.bf16.msra.mxu1 %v1269_v37 }
 0x19b   :  { %v1216_v14 = vpop.permute.xlu0 %1215  ;;  %v732_v17 = vpop.permute.xlu1 %731 }
 0x19c   :  { %v782_v9 = vsel %vm773_vm5, %v730_v25, %v732_v17  ;;  %v1261_v36 = vsel %vm241_vm2, %v1214_v6, %v1216_v14 }
 0x19d   :  { %1778 = vrot.lane.b32.xlu1 %v2811_v19, %s2343_s24  ;;  %1754 = vrot.lane.b32.xlu0 %v2901_v1, %s2343_s24 }
 0x19e   :  { %2177 = vmatpush3.bf16.msra.mxu0 %v782_v9  ;;  %1320 = vmatprep.subr.bf16.mxu1 %v1261_v36 }
 0x19f   :  { %v1212_v32 = vpop.permute.xlu0 %1211  ;;  %v1238_v41 = vpop.permute.xlu1 %1237 }
 0x1a0   :  { %v1260_v63 = vsel %vm241_vm2, %v1212_v32, %v1214_v6 }
 0x1a1   :  { %2179 = vmatmul.mubr.msk.bf16.vlgmr.msra.gmra.mxu0 %vm296_vm3, %v3014_v2  ;;  %1756 = vrot.lane.b32.xlu1 %v2911_v4, %s2343_s24 }
 0x1a2   :  { %1758 = vrot.lane.b32.xlu0 %v2821_v22, %s2343_s24  ;;  %1321 = vmatpush1.bf16.msra.mxu1 %v1260_v63  ;;  %v3102_v22 = vld [vmem:[#allocation5 + $0x4] sm:$0xf] }
 0x1a3   :  { %v1196_v21 = vpop.permute.xlu0 %1195  ;;  %1381 = vmatprep.mubr.bf16.mxu0 %v3320_v47  ;;  %v1242_v10 = vpop.permute.xlu1 %1241 }
 0x1a4   :  { %v1252_v19 = vsel %vm241_vm2, %v1194_v15, %v1196_v21 }
 0x1a5   :  { %1734 = vrot.lane.b32.xlu1 %v2480_v16, %s2343_s24  ;;  %1322 = vmatprep.subr.bf16.mxu1 %v1252_v19  ;;  %v1271_v16 = vsel %vm241_vm2, %v1236_v3, %v1238_v41 }
 0x1a6   :  { %1736 = vrot.lane.b32.xlu0 %v2604_v59, %s2343_s24 }
 0x1a7   :  { %v1192_v40 = vpop.permute.xlu0 %1191  ;;  %v1218_v5 = vpop.permute.xlu1 %1217 }
 0x1a8   :  { %v1251_v39 = vsel %vm241_vm2, %v1192_v40, %v1194_v15  ;;  %v1262_v18 = vsel %vm241_vm2, %v1216_v14, %v1218_v5 }
 0x1a9   :  { %1738 = vrot.lane.b32.xlu1 %v2592_v56, %s2343_s24  ;;  %1323 = vmatpush1.bf16.msra.mxu1 %v1251_v39 }
 0x1ab   :  { %v1240_v2 = vpop.permute.xlu0 %1239 }
 0x1ac   :  { %v1272_v23 = vsel %vm241_vm2, %v1238_v41, %v1240_v2  ;;  %2113 = vmatmul.mubr.msk.bf16.vlgmr.msra.gmra.mxu1 %vm296_vm3, %v3102_v22  ;;  %v1273_v56 = vsel %vm241_vm2, %v1240_v2, %v1242_v10 }
 0x1ad   :  { %1359 = vmatprep.subr.bf16.mxu0 %v1272_v23  ;;  %1422 = vmatprep.mubr.bf16.mxu1 %v3320_v47 }
 0x1ae   :  { %1360 = vmatpush1.bf16.msra.mxu0 %v1271_v16  ;;  %v2264_v16 = vld [vmem:[#allocation2 + $0x6c] ss:$40 sps:$4 sm:$0xff]  }
 0x1af   :  { %v1244_v59 = vpop.permute.xlu0 %1243 }
 0x1b0   :  { %v1274_v45 = vsel %vm241_vm2, %v1242_v10, %v1244_v59  ;;  %v2260_v10 = vld [vmem:[#allocation2 + $0x5c] ss:$40 sps:$4 sm:$0xff]  }
 0x1b1   :  { %1400 = vmatprep.subr.bf16.mxu1 %v1274_v45 }
 0x1b2   :  { %1401 = vmatpush1.bf16.msra.mxu1 %v1273_v56 }
 0x1b3   :  { %v1220_v34 = vpop.permute.xlu0 %1219 }
 0x1b4   :  { %v1263_v46 = vsel %vm241_vm2, %v1218_v5, %v1220_v34 }
 0x1b5   :  { %1361 = vmatprep.subr.bf16.mxu0 %v1263_v46 }
 0x1b6   :  { %1362 = vmatpush1.bf16.msra.mxu0 %v1262_v18 }
 0x1c3   :  { %v1224_v48 = vpop.permute.xlu0 %1223  ;;  %v1222_v51 = vpop.permute.xlu1 %1221 }
 0x1c4   :  { %v1264_v53 = vsel %vm241_vm2, %v1220_v34, %v1222_v51  ;;  %v1265_v28 = vsel %vm241_vm2, %v1222_v51, %v1224_v48 }
 0x1c5   :  { %1402 = vmatprep.subr.bf16.mxu1 %v1265_v28 }
 0x1c6   :  { %1403 = vmatpush1.bf16.msra.mxu1 %v1264_v53 }
 0x1c7   :  { %v1200_v0 = vpop.permute.xlu0 %1199  ;;  %v1198_v38 = vpop.permute.xlu1 %1197 }
 0x1c8   :  { %v1253_v26 = vsel %vm241_vm2, %v1196_v21, %v1198_v38  ;;  %v1254_v55 = vsel %vm241_vm2, %v1198_v38, %v1200_v0 }
 0x1c9   :  { %1363 = vmatprep.subr.bf16.mxu0 %v1254_v55 }
 0x1ca   :  { %1364 = vmatpush1.bf16.msra.mxu0 %v1253_v26 }
 0x1cb   :  { %v1204_v61 = vpop.permute.xlu0 %1203  ;;  %v1202_v25 = vpop.permute.xlu1 %1201 }
 0x1cc   :  { %v1255_v6 = vsel %vm241_vm2, %v1200_v0, %v1202_v25  ;;  %v1256_v30 = vsel %vm241_vm2, %v1202_v25, %v1204_v61 }
 0x1cd   :  { %1404 = vmatprep.subr.bf16.mxu1 %v1256_v30  ;;  %2114 = vmatmul.mubr.msk.bf16.vlgmr.msra.gmra.mxu0 %vm296_vm3, %v3102_v22 }
 0x1ce   :  { %1405 = vmatpush1.bf16.msra.mxu1 %v1255_v6  ;;  %1463 = vmatprep.mubr.bf16.mxu0 %v3320_v47 }
 0x1cf   :  { %v1248_v27 = vpop.permute.xlu0 %1247  ;;  %v1246_v62 = vpop.permute.xlu1 %1245  ;;  %2182 = vmatprep.subr.bf16.mxu1 %v2344_v58 }
 0x1d0   :  { %v1275_v3 = vsel %vm241_vm2, %v1244_v59, %v1246_v62  ;;  %v1276_v52 = vsel %vm241_vm2, %v1246_v62, %v1248_v27 }
 0x1d1   :  { %1441 = vmatprep.subr.bf16.mxu0 %v1276_v52  ;;  %2115 = vmatmul.mubr.msk.bf16.vlgmr.msra.gmra.mxu1 %vm296_vm3, %v3102_v22 }
 0x1d2   :  { %1442 = vmatpush1.bf16.msra.mxu0 %v1275_v3  ;;  %2188 = vmatprep.mubr.msk.bf16.mxu1 %vm2345_vm4, %v2344_v58 }
 0x1d3   :  { %v1226_v7 = vpop.permute.xlu0 %1225  ;;  %v1250_v57 = vpop.permute.xlu1 %1249 }
 0x1d4   :  { %v1277_v13 = vsel %vm241_vm2, %v1248_v27, %v1250_v57  ;;  %v1266_v9 = vsel %vm241_vm2, %v1224_v48, %v1226_v7  ;;  %v2266_v48 = vld [vmem:[#allocation2 + $0x70] ss:$40 sps:$4 sm:$0xff]  }
 0x1d5   :  { %2183 = vmatpush3.bf16.msra.mxu1 %v1277_v13 }
 0x1d6   :  { %2184 = vmatprep.subr.bf16.mxu1 %v2344_v58 }
 0x1d7   :  { %v1230_v15 = vpop.permute.xlu0 %1229  ;;  %v1228_v37 = vpop.permute.xlu1 %1227 }
 0x1d8   :  { %v1268_v14 = vsel %vm241_vm2, %v1228_v37, %v1230_v15  ;;  %v1267_v17 = vsel %vm241_vm2, %v1226_v7, %v1228_v37 }
 0x1d9   :  { %1443 = vmatprep.subr.bf16.mxu0 %v1267_v17  ;;  %2185 = vmatpush3.bf16.msra.mxu1 %v1268_v14 }
 0x1da   :  { %1444 = vmatpush1.bf16.msra.mxu0 %v1266_v9  ;;  %2186 = vmatprep.subr.bf16.mxu1 %v2344_v58 }
 0x1db   :  { %v1208_v36 = vpop.permute.xlu0 %1207  ;;  %v1206_v32 = vpop.permute.xlu1 %1205 }
 0x1dc   :  { %v1257_v63 = vsel %vm241_vm2, %v1204_v61, %v1206_v32  ;;  %v1258_v21 = vsel %vm241_vm2, %v1206_v32, %v1208_v36  ;;  %v3214_v61 = vld [vmem:[#allocation5 + $0x8] sm:$0xf] }
 0x1dd   :  { %1445 = vmatprep.subr.bf16.mxu0 %v1258_v21 }
 0x1de   :  { %1446 = vmatpush1.bf16.msra.mxu0 %v1257_v63 }
 0x1df   :  { %v3137_v19 = vpop.permute.xlu0 %1762  ;;  %1525 = vmatprep.subr.bf16.mxu0 %v2683_v44  ;;  %v1210_v41 = vpop.permute.xlu1 %1209 }
 0x1e0   :  { %v1259_v40 = vsel %vm241_vm2, %v1208_v36, %v1210_v41 }
 0x1e1   :  { %2116 = vmatmul.mubr.msk.bf16.vlgmr.msra.gmra.mxu0 %vm296_vm3, %v3102_v22  ;;  %2187 = vmatpush3.bf16.msra.mxu1 %v1259_v40 }
 0x1e2   :  { %1526 = vmatpush1.bf16.msra.mxu0 %v3324_v50  ;;  %1566 = vmatprep.subr.bf16.mxu1 %v3332_v11  ;;  %v2258_v11 = vld [vmem:[#allocation2 + $0x54] ss:$40 sps:$4 sm:$0xff]  }
 0x1e3   :  { %v1761_v39 = vpop.permute.xlu0 %1760  ;;  %1527 = vmatprep.subr.bf16.mxu0 %v3327_v35  ;;  %v3146_v2 = vpop.permute.xlu1 %1764  ;;  %1547 = vmatprep.mubr.bf16.mxu0 %v3320_v47  ;;  %v2259_v35 = vld [vmem:[#allocation2 + $0x50] ss:$40 sps:$4 sm:$0xff]  }
 0x1e4   :  { %2189 = vmatmul.mubr.msk.bf16.vlgmr.msra.gmra.mxu1 %vm296_vm3, %v3102_v22  ;;  %v3158_v22 = vld [vmem:[#allocation5] sm:$0xf]  ;;  %v1798_v56 = vsel %vm773_vm5, %v1761_v39, %v3137_v19 }
 0x1e5   :  { %1567 = vmatpush1.bf16.msra.mxu1 %v2705_v54  ;;  %1588 = vmatprep.mubr.bf16.mxu1 %v3320_v47 }
 0x1e6   :  { %1528 = vmatpush1.bf16.msra.mxu0 %v3330_v24  ;;  %1568 = vmatprep.subr.bf16.mxu1 %v2751_v12  ;;  %v2261_v12 = vld [vmem:[#allocation2 + $0x58] ss:$40 sps:$4 sm:$0xff]  }
 0x1e7   :  { %v3155_v44 = vpop.permute.xlu0 %1744  ;;  %v1743_v50 = vpop.permute.xlu1 %1742  ;;  %1529 = vmatprep.subr.bf16.mxu0 %v2258_v11 }
 0x1e8   :  { %v1790_v5 = vsel %vm773_vm5, %v1743_v50, %v3155_v44 }
 0x1e9   :  { %1569 = vmatpush1.bf16.msra.mxu1 %v3328_v8 }
 0x1ea   :  { %1530 = vmatpush1.bf16.msra.mxu0 %v2259_v35  ;;  %1570 = vmatprep.subr.bf16.mxu1 %v2260_v10 }
 0x1eb   :  { %v1723_v54 = vpop.permute.xlu0 %1722  ;;  %1607 = vmatprep.subr.bf16.mxu0 %v3333_v49  ;;  %v1741_v23 = vpop.permute.xlu1 %1740  ;;  %v2262_v49 = vld [vmem:[#allocation2 + $0x64] ss:$40 sps:$4 sm:$0xff]  }
 0x1ec   :  { %v1789_v46 = vsel %vm773_vm5, %v1741_v23, %v1743_v50 }
 0x1ed   :  { %2118 = vmatmul.mubr.msk.bf16.vlgmr.msra.gmra.mxu0 %vm296_vm3, %v3158_v22  ;;  %1571 = vmatpush1.bf16.msra.mxu1 %v2261_v12 }
 0x1ee   :  { %1608 = vmatpush1.bf16.msra.mxu0 %v2759_v43  ;;  %1648 = vmatprep.subr.bf16.mxu1 %v2881_v29 }
 0x1ef   :  { %v1721_v8 = vpop.permute.xlu0 %1720  ;;  %1609 = vmatprep.subr.bf16.mxu0 %v2826_v20  ;;  %v3166_v24 = vpop.permute.xlu1 %1724  ;;  %1629 = vmatprep.mubr.bf16.mxu0 %v3320_v47  ;;  %v2263_v20 = vld [vmem:[#allocation2 + $0x60] ss:$40 sps:$4 sm:$0xff]  }
 0x1f0   :  { %2119 = vmatmul.mubr.msk.bf16.vlgmr.msra.gmra.mxu1 %vm296_vm3, %v3158_v22  ;;  %v1781_v18 = vsel %vm773_vm5, %v1723_v54, %v3166_v24  ;;  %v1780_v0 = vsel %vm773_vm5, %v1721_v8, %v1723_v54 }
 0x1f1   :  { %1649 = vmatpush1.bf16.msra.mxu1 %v2770_v31  ;;  %1670 = vmatprep.mubr.bf16.mxu1 %v3320_v47  ;;  %v2265_v31 = vld [vmem:[#allocation2 + $0x68] ss:$40 sps:$4 sm:$0xff]  }
 0x1f2   :  { %1610 = vmatpush1.bf16.msra.mxu0 %v2786_v33  ;;  %1650 = vmatprep.subr.bf16.mxu1 %v2901_v1  ;;  %v1799_v33 = vsel %vm773_vm5, %v3137_v19, %v3146_v2 }
 0x1f3   :  { %v1769_v43 = vpop.permute.xlu0 %1768  ;;  %v1767_v29 = vpop.permute.xlu1 %1766  ;;  %1611 = vmatprep.subr.bf16.mxu0 %v2262_v49 }
 0x1f4   :  { %v1801_v51 = vsel %vm773_vm5, %v1767_v29, %v1769_v43  ;;  %v1800_v26 = vsel %vm773_vm5, %v3146_v2, %v1767_v29 }
 0x1f5   :  { %1651 = vmatpush1.bf16.msra.mxu1 %v2830_v60 }
 0x1f6   :  { %1612 = vmatpush1.bf16.msra.mxu0 %v2263_v20  ;;  %1652 = vmatprep.subr.bf16.mxu1 %v2264_v16 }
 0x1f7   :  { %v3176_v59 = vpop.permute.xlu0 %1772  ;;  %v1771_v45 = vpop.permute.xlu1 %1770  ;;  %2192 = vmatprep.subr.bf16.mxu0 %v2344_v58 }
 0x1f8   :  { %v1803_v55 = vsel %vm773_vm5, %v1771_v45, %v3176_v59  ;;  %v1802_v3 = vsel %vm773_vm5, %v1769_v43, %v1771_v45 }
 0x1f9   :  { %2120 = vmatmul.mubr.msk.bf16.vlgmr.msra.gmra.mxu0 %vm296_vm3, %v3158_v22  ;;  %1653 = vmatpush1.bf16.msra.mxu1 %v2265_v31 }
 0x1fa   :  { %2193 = vmatpush3.bf16.msra.mxu0 %v2871_v42  ;;  %1847 = vmatprep.subr.bf16.mxu1 %v1799_v33 }
 0x1fb   :  { %v1749_v60 = vpop.permute.xlu0 %1748  ;;  %v1747_v1 = vpop.permute.xlu1 %1746  ;;  %2194 = vmatprep.subr.bf16.mxu0 %v2344_v58  ;;  %2198 = vmatprep.mubr.msk.bf16.mxu0 %vm2345_vm4, %v2344_v58 }
 0x1fc   :  { %2121 = vmatmul.mubr.msk.bf16.vlgmr.msra.gmra.mxu1 %vm296_vm3, %v3158_v22  ;;  %v1792_v6 = vsel %vm773_vm5, %v1747_v1, %v1749_v60  ;;  %v1791_v57 = vsel %vm773_vm5, %v3155_v44, %v1747_v1 }
 0x1fd   :  { %1848 = vmatpush1.bf16.msra.mxu1 %v1798_v56  ;;  %1869 = vmatprep.mubr.bf16.mxu1 %v3320_v47 }
 0x1fe   :  { %2195 = vmatpush3.bf16.msra.mxu0 %v2911_v4  ;;  %1849 = vmatprep.subr.bf16.mxu1 %v1790_v5 }
 0x1ff   :  { %v3196_v42 = vpop.permute.xlu0 %1752  ;;  %v1751_v34 = vpop.permute.xlu1 %1750  ;;  %2196 = vmatprep.subr.bf16.mxu0 %v2344_v58 }
 0x200   :  { %v1794_v13 = vsel %vm773_vm5, %v1751_v34, %v3196_v42  ;;  %v1793_v9 = vsel %vm773_vm5, %v1749_v60, %v1751_v34 }
 0x201   :  { %1850 = vmatpush1.bf16.msra.mxu1 %v1789_v46 }
 0x202   :  { %2197 = vmatpush3.bf16.msra.mxu0 %v2266_v48  ;;  %1851 = vmatprep.subr.bf16.mxu1 %v1781_v18  ;;  %v3203_v53 = vpop.f32.mrf.mxu0 }
 0x203   :  { %v1729_v4 = vpop.permute.xlu0 %1728  ;;  %1888 = vmatprep.subr.bf16.mxu0 %v1801_v51  ;;  %v1727_v28 = vpop.permute.xlu1 %1726 }
 0x204   :  { %v3206_v38 = vpop.f32.mrf.mxu0  ;;  %v1783_v15 = vsel %vm773_vm5, %v1727_v28, %v1729_v4  ;;  %v1782_v32 = vsel %vm773_vm5, %v3166_v24, %v1727_v28 }
 0x205   :  { %2199 = vmatmul.mubr.msk.bf16.vlgmr.msra.gmra.mxu0 %vm296_vm3, %v3158_v22  ;;  %1852 = vmatpush1.bf16.msra.mxu1 %v1780_v0  ;;  %v3216_v25 = vpop.f32.mrf.mxu1 }
 0x206   :  { %1889 = vmatpush1.bf16.msra.mxu0 %v1800_v26  ;;  %1929 = vmatprep.subr.bf16.mxu1 %v1803_v55  ;;  %v338_v30 = vpop.f32.mrf.mxu0 }
 0x207   :  { %v1733_v27 = vpop.permute.xlu0 %1732  ;;  %1890 = vmatprep.subr.bf16.mxu0 %v1792_v6  ;;  %v1731_v62 = vpop.permute.xlu1 %1730  ;;  %1910 = vmatprep.mubr.bf16.mxu0 %v3320_v47 }
 0x208   :  { %2123 = vmatmul.mubr.msk.bf16.vlgmr.msra.gmra.mxu1 %vm296_vm3, %v3214_v61  ;;  %v339_v52 = vpop.f32.mrf.mxu0  ;;  %v3223_v7 = vpop.f32.mrf.mxu1  ;;  %v1785_v63 = vsel %vm773_vm5, %v1731_v62, %v1733_v27  ;;  %v1784_v40 = vsel %vm773_vm5, %v1729_v4, %v1731_v62 }
 0x209   :  { %1930 = vmatpush1.bf16.msra.mxu1 %v1802_v3  ;;  %1951 = vmatprep.mubr.bf16.mxu1 %v3320_v47 }
 0x20a   :  { %1891 = vmatpush1.bf16.msra.mxu0 %v1791_v57  ;;  %1931 = vmatprep.subr.bf16.mxu1 %v1794_v13  ;;  %v379_v37 = vpop.f32.mrf.mxu1 }
 0x20b   :  { %v1777_v14 = vpop.permute.xlu0 %1776  ;;  %1892 = vmatprep.subr.bf16.mxu0 %v1783_v15  ;;  %v1775_v17 = vpop.permute.xlu1 %1774 }
 0x20c   :  { %v380_v36 = vpop.f32.mrf.mxu1  ;;  %v1805_v21 = vsel %vm773_vm5, %v1775_v17, %v1777_v14  ;;  %v1804_v39 = vsel %vm773_vm5, %v3176_v59, %v1775_v17 }
 0x20d   :  { %1932 = vmatpush1.bf16.msra.mxu1 %v1793_v9 }
 0x20e   :  { %1893 = vmatpush1.bf16.msra.mxu0 %v1782_v32  ;;  %1933 = vmatprep.subr.bf16.mxu1 %v1785_v63 }
 0x20f   :  { %v1755_v19 = vpop.permute.xlu0 %1754  ;;  %1970 = vmatprep.subr.bf16.mxu0 %v1805_v21  ;;  %v1779_v41 = vpop.permute.xlu1 %1778 }
 0x210   :  { %v1806_v50 = vsel %vm773_vm5, %v1777_v14, %v1779_v41  ;;  %v1795_v22 = vsel %vm773_vm5, %v3196_v42, %v1755_v19 }
 0x211   :  { %2124 = vmatmul.mubr.msk.bf16.vlgmr.msra.gmra.mxu0 %vm296_vm3, %v3214_v61  ;;  %1934 = vmatpush1.bf16.msra.mxu1 %v1784_v40 }
 0x212   :  { %1971 = vmatpush1.bf16.msra.mxu0 %v1804_v39  ;;  %2202 = vmatprep.subr.bf16.mxu1 %v2344_v58  ;;  %v3242_v2 = vpop.f32.mrf.mxu0 }
 0x213   :  { %v1757_v44 = vpop.permute.xlu1 %1756  ;;  %1992 = vmatprep.mubr.bf16.mxu0 %v3320_v47 }
 0x214   :  { %v1759_v11 = vpop.permute.xlu0 %1758  ;;  %2125 = vmatmul.mubr.msk.bf16.vlgmr.msra.gmra.mxu1 %vm296_vm3, %v3214_v61  ;;  %v1796_v35 = vsel %vm773_vm5, %v1755_v19, %v1757_v44  ;;  %v3249_v10 = vpop.f32.mrf.mxu0 }
 0x215   :  { %1972 = vmatprep.subr.bf16.mxu0 %v1796_v35  ;;  %2203 = vmatpush3.bf16.msra.mxu1 %v1806_v50  ;;  %v1797_v12 = vsel %vm773_vm5, %v1757_v44, %v1759_v11 }
 0x216   :  { %1973 = vmatpush1.bf16.msra.mxu0 %v1795_v22  ;;  %2204 = vmatprep.subr.bf16.mxu1 %v2344_v58  ;;  %v420_v54 = vpop.f32.mrf.mxu0  ;;  %v3254_v47 = vpop.f32.mrf.mxu1 }
 0x217   :  { %v1735_v23 = vpop.permute.xlu1 %1734  ;;  %2208 = vmatprep.mubr.msk.bf16.mxu1 %vm2345_vm4, %v2344_v58 }
 0x218   :  { %v1737_v8 = vpop.permute.xlu0 %1736  ;;  %v1786_v24 = vsel %vm773_vm5, %v1733_v27, %v1735_v23  ;;  %v421_v43 = vpop.f32.mrf.mxu0 }
 0x219   :  { %v1787_v29 = vsel %vm773_vm5, %v1735_v23, %v1737_v8  ;;  %2205 = vmatpush3.bf16.msra.mxu1 %v1797_v12  ;;  %v3261_v49 = vpop.f32.mrf.mxu1 }
 0x21a   :  { %1974 = vmatprep.subr.bf16.mxu0 %v1787_v29  ;;  %2206 = vmatprep.subr.bf16.mxu1 %v2344_v58 }
 0x21b   :  { %1975 = vmatpush1.bf16.msra.mxu0 %v1786_v24  ;;  %v1739_v20 = vpop.permute.xlu1 %1738  ;;  %v461_v16 = vpop.f32.mrf.mxu1 }
 0x21c   :  { %v1788_v59 = vsel %vm773_vm5, %v1737_v8, %v1739_v20 }
 0x21d   :  { %2207 = vmatpush3.bf16.msra.mxu1 %v1788_v59  ;;  %v462_v45 = vpop.f32.mrf.mxu1 }
 0x21e   :  { %2126 = vmatmul.mubr.msk.bf16.vlgmr.msra.gmra.mxu0 %vm296_vm3, %v3214_v61  ;;  %v3267_v31 = vpop.f32.mrf.mxu0 }
 0x220   :  { %2209 = vmatmul.mubr.msk.bf16.vlgmr.msra.gmra.mxu1 %vm296_vm3, %v3214_v61  ;;  %v2160_v33 = vpop.f32.mrf.mxu0 }
 0x222   :  { %v501_v60 = vpop.f32.mrf.mxu0  ;;  %v541_v1 = vpop.f32.mrf.mxu1 }
 0x223   :  { %v542_v52 = vadd.f32 %v541_v1, %v3203_v53 }
 0x224   :  { %v2161_v56 = vpop.f32.mrf.mxu0  ;;  %v543_v58 = vpop.f32.mrf.mxu1 }
 0x225   :  { %v544_v13 = vadd.f32 %v543_v58, %v3206_v38 }
 0x226   :  { %v545_v5 = vpop.f32.mrf.mxu1 }
 0x228   :  { %v546_v42 = vpop.f32.mrf.mxu1 }
 0x22a   :  { %v582_v34 = vpop.f32.mrf.mxu0 }
 0x22b   :  { %v583_v14 = vadd.f32 %v582_v34, %v3216_v25 }
 0x22c   :  { %v584_v46 = vpop.f32.mrf.mxu0 }
 0x22d   :  { %v585_v32 = vadd.f32 %v584_v46, %v3223_v7 }
 0x22e   :  { %v586_v18 = vpop.f32.mrf.mxu0  ;;  %v623_v48 = vpop.f32.mrf.mxu1 }
 0x22f   :  { %v624_v38 = vadd.f32 %v623_v48, %v3242_v2 }
 0x230   :  { %v587_v51 = vpop.f32.mrf.mxu0  ;;  %v625_v4 = vpop.f32.mrf.mxu1 }
 0x231   :  { %v626_v25 = vadd.f32 %v625_v4, %v3249_v10 }
 0x232   :  { %v627_v28 = vpop.f32.mrf.mxu1 }
 0x234   :  { %v628_v0 = vpop.f32.mrf.mxu1 }
 0x236   :  { %v664_v26 = vpop.f32.mrf.mxu0 }
 0x237   :  { %v665_v11 = vadd.f32 %v664_v26, %v3254_v47 }
 0x238   :  { %v666_v55 = vpop.f32.mrf.mxu0 }
 0x239   :  { %v667_v54 = vadd.f32 %v666_v55, %v3261_v49 }
 0x23a   :  { %v668_v6 = vpop.f32.mrf.mxu0  ;;  %v705_v30 = vpop.f32.mrf.mxu1 }
 0x23b   :  { %v706_v10 = vadd.f32 %v705_v30, %v3267_v31 }
 0x23c   :  { %v669_v61 = vpop.f32.mrf.mxu0  ;;  %v2170_v27 = vpop.f32.mrf.mxu1 }
 0x23e   :  { %v708_v62 = vpop.f32.mrf.mxu1 }
 0x240   :  { %v2171_v3 = vpop.f32.mrf.mxu1 }
 0x242   :  { %v865_v57 = vpop.f32.mrf.mxu0 }
 0x243   :  { %v1035_v15 = vadd.f32 %v865_v57, %v542_v52 }
 0x244   :  { %v867_v37 = vpop.f32.mrf.mxu0 }
 0x245   :  { %1044 = vst [vmem:[#allocation7] sm:$0xff] %v1035_v15  ;;  %v1036_v17 = vadd.f32 %v867_v37, %v544_v13 }
 0x246   :  { %v906_v9 = vpop.f32.mrf.mxu1  ;;  %v869_v36 = vpop.f32.mrf.mxu0 }
 0x247   :  { %1045 = vst [vmem:[#allocation7 + $0x8] sm:$0xff] %v1036_v17  ;;  %v1037_v63 = vadd.f32 %v906_v9, %v583_v14 }
 0x248   :  { %v908_v21 = vpop.f32.mrf.mxu1  ;;  %v870_v19 = vpop.f32.mrf.mxu0 }
 0x249   :  { %1046 = vst [vmem:[#allocation7 + $0x10] sm:$0xff] %v1037_v63  ;;  %v1038_v41 = vadd.f32 %v908_v21, %v585_v32 }
 0x24a   :  { %v910_v53 = vpop.f32.mrf.mxu1 }
 0x24b   :  { %1047 = vst [vmem:[#allocation7 + $0x18] sm:$0xff] %v1038_v41 }
 0x24c   :  { %v911_v40 = vpop.f32.mrf.mxu1 }
 0x252   :  { %v947_v39 = vpop.f32.mrf.mxu0 }
 0x253   :  { %v1039_v44 = vadd.f32 %v947_v39, %v624_v38 }
 0x254   :  { %v949_v50 = vpop.f32.mrf.mxu0 }
 0x255   :  { %1048 = vst [vmem:[#allocation7 + $0x20] sm:$0xff] %v1039_v44  ;;  %v1040_v7 = vadd.f32 %v949_v50, %v626_v25 }
 0x256   :  { %v988_v35 = vpop.f32.mrf.mxu1  ;;  %v951_v22 = vpop.f32.mrf.mxu0 }
 0x257   :  { %1049 = vst [vmem:[#allocation7 + $0x28] sm:$0xff] %v1040_v7  ;;  %v1041_v23 = vadd.f32 %v988_v35, %v665_v11 }
 0x258   :  { %v990_v12 = vpop.f32.mrf.mxu1  ;;  %v952_v8 = vpop.f32.mrf.mxu0 }
 0x259   :  { %1050 = vst [vmem:[#allocation7 + $0x30] sm:$0xff] %v1041_v23  ;;  %v1042_v24 = vadd.f32 %v990_v12, %v667_v54 }
 0x25a   :  { %v992_v2 = vpop.f32.mrf.mxu1 }
 0x25b   :  { %1051 = vst [vmem:[#allocation7 + $0x38] sm:$0xff] %v1042_v24 }
 0x25c   :  { %v993_v43 = vpop.f32.mrf.mxu1 }
 0x261   :  { %v1029_v29 = vpop.f32.mrf.mxu0 }
 0x262   :  { %v1043_v20 = vadd.f32 %v1029_v29, %v706_v10 }
 0x263   :  { %v2180_v47 = vpop.f32.mrf.mxu0 }
 0x264   :  { %1052 = vst [vmem:[#allocation7 + $0x40] sm:$0xff] %v1043_v20 }
 0x265   :  { %v1032_v16 = vpop.f32.mrf.mxu0 }
 0x267   :  { %v2181_v59 = vpop.f32.mrf.mxu0 }
 0x26c   :  { %v1342_v45 = vpop.f32.mrf.mxu1 }
 0x26e   :  { %v1344_v33 = vpop.f32.mrf.mxu1 }
 0x270   :  { %v1346_v49 = vpop.f32.mrf.mxu1 }
 0x272   :  { %v1347_v60 = vpop.f32.mrf.mxu1 }
 0x28d   :  { %v1383_v1 = vpop.f32.mrf.mxu0 }
 0x28f   :  { %v1385_v56 = vpop.f32.mrf.mxu0 }
 0x291   :  { %v1424_v58 = vpop.f32.mrf.mxu1  ;;  %v1387_v5 = vpop.f32.mrf.mxu0 }
 0x293   :  { %v1426_v42 = vpop.f32.mrf.mxu1  ;;  %v1388_v34 = vpop.f32.mrf.mxu0 }
 0x295   :  { %v1428_v46 = vpop.f32.mrf.mxu1 }
 0x297   :  { %v1429_v18 = vpop.f32.mrf.mxu1 }
 0x2a1   :  { %v1465_v48 = vpop.f32.mrf.mxu0 }
 0x2a3   :  { %v1467_v31 = vpop.f32.mrf.mxu0 }
 0x2a4   :  { %v1506_v51 = vpop.f32.mrf.mxu1 }
 0x2a5   :  { %v1469_v4 = vpop.f32.mrf.mxu0 }
 0x2a6   :  { %v2190_v28 = vpop.f32.mrf.mxu1 }
 0x2a7   :  { %v1470_v0 = vpop.f32.mrf.mxu0 }
 0x2a8   :  { %v1509_v26 = vpop.f32.mrf.mxu1 }
 0x2aa   :  { %v2191_v55 = vpop.f32.mrf.mxu1 }
 0x2ad   :  { %v1549_v6 = vpop.f32.mrf.mxu0 }
 0x2ae   :  { %v1550_v21 = vadd.f32 %v1549_v6, %v1342_v45 }
 0x2af   :  { %v1551_v30 = vpop.f32.mrf.mxu0 }
 0x2b0   :  { %v1590_v61 = vpop.f32.mrf.mxu1  ;;  %v1552_v53 = vadd.f32 %v1551_v30, %v1344_v33 }
 0x2b1   :  { %v1553_v27 = vpop.f32.mrf.mxu0  ;;  %v1591_v7 = vadd.f32 %v1590_v61, %v1383_v1 }
 0x2b2   :  { %v1592_v62 = vpop.f32.mrf.mxu1 }
 0x2b3   :  { %v1554_v3 = vpop.f32.mrf.mxu0  ;;  %v1593_v22 = vadd.f32 %v1592_v62, %v1385_v56 }
 0x2b4   :  { %v1594_v52 = vpop.f32.mrf.mxu1 }
 0x2b6   :  { %v1595_v57 = vpop.f32.mrf.mxu1 }
 0x2b9   :  { %v1631_v13 = vpop.f32.mrf.mxu0 }
 0x2ba   :  { %v1632_v23 = vadd.f32 %v1631_v13, %v1424_v58 }
 0x2bb   :  { %v1633_v15 = vpop.f32.mrf.mxu0 }
 0x2bc   :  { %v1672_v37 = vpop.f32.mrf.mxu1  ;;  %v1634_v2 = vadd.f32 %v1633_v15, %v1426_v42 }
 0x2bd   :  { %v1635_v14 = vpop.f32.mrf.mxu0  ;;  %v1673_v45 = vadd.f32 %v1672_v37, %v1465_v48 }
 0x2be   :  { %v1674_v17 = vpop.f32.mrf.mxu1 }
 0x2bf   :  { %v1636_v9 = vpop.f32.mrf.mxu0  ;;  %v1675_v49 = vadd.f32 %v1674_v17, %v1467_v31 }
 0x2c0   :  { %v1676_v36 = vpop.f32.mrf.mxu1 }
 0x2c2   :  { %v1677_v32 = vpop.f32.mrf.mxu1 }
 0x2c5   :  { %v1713_v63 = vpop.f32.mrf.mxu0 }
 0x2c6   :  { %v1714_v60 = vadd.f32 %v1713_v63, %v1506_v51 }
 0x2c7   :  { %v2200_v19 = vpop.f32.mrf.mxu0 }
 0x2c8   :  { %v1871_v41 = vpop.f32.mrf.mxu1 }
 0x2c9   :  { %v2041_v40 = vadd.f32 %v1871_v41, %v1550_v21  ;;  %v1716_v38 = vpop.f32.mrf.mxu0 }
 0x2ca   :  { %v1873_v39 = vpop.f32.mrf.mxu1 }
 0x2cb   :  { %2051 = vst [vmem:[#allocation7 + $0x48] sm:$0xff] %v2041_v40  ;;  %v2042_v25 = vadd.f32 %v1873_v39, %v1552_v53  ;;  %v2201_v44 = vpop.f32.mrf.mxu0 }
 0x2cc   :  { %v1875_v50 = vpop.f32.mrf.mxu1 }
 0x2cd   :  { %2052 = vst [vmem:[#allocation7 + $0x50] sm:$0xff] %v2042_v25 }
 0x2ce   :  { %v1876_v11 = vpop.f32.mrf.mxu1 }
 0x2d1   :  { %v1912_v35 = vpop.f32.mrf.mxu0 }
 0x2d2   :  { %v2043_v54 = vadd.f32 %v1912_v35, %v1591_v7 }
 0x2d3   :  { %v1914_v12 = vpop.f32.mrf.mxu0 }
 0x2d4   :  { %2053 = vst [vmem:[#allocation7 + $0x58] sm:$0xff] %v2043_v54  ;;  %v2044_v8 = vadd.f32 %v1914_v12, %v1593_v22  ;;  %v1953_v24 = vpop.f32.mrf.mxu1 }
 0x2d5   :  { %v2045_v43 = vadd.f32 %v1953_v24, %v1632_v23  ;;  %v1916_v10 = vpop.f32.mrf.mxu0 }
 0x2d6   :  { %2054 = vst [vmem:[#allocation7 + $0x60] sm:$0xff] %v2044_v8  ;;  %v1955_v29 = vpop.f32.mrf.mxu1 }
 0x2d7   :  { %2055 = vst [vmem:[#allocation7 + $0x68] sm:$0xff] %v2045_v43  ;;  %v2046_v20 = vadd.f32 %v1955_v29, %v1634_v2  ;;  %v1917_v47 = vpop.f32.mrf.mxu0 }
 0x2d8   :  { %v1957_v16 = vpop.f32.mrf.mxu1 }
 0x2d9   :  { %2056 = vst [vmem:[#allocation7 + $0x70] sm:$0xff] %v2046_v20 }
 0x2da   :  { %v1958_v59 = vpop.f32.mrf.mxu1 }
 0x2de   :  { %v1994_v33 = vpop.f32.mrf.mxu0 }
 0x2df   :  { %v2047_v1 = vadd.f32 %v1994_v33, %v1673_v45 }
 0x2e0   :  { %v1996_v56 = vpop.f32.mrf.mxu0  ;;  %v2035_v58 = vpop.f32.mrf.mxu1 }
 0x2e1   :  { %2057 = vst [vmem:[#allocation7 + $0x78] sm:$0xff] %v2047_v1  ;;  %v2048_v5 = vadd.f32 %v1996_v56, %v1675_v49  ;;  %v2049_v42 = vadd.f32 %v2035_v58, %v1714_v60 }
 0x2e2   :  { %v1998_v34 = vpop.f32.mrf.mxu0  ;;  %v2210_v46 = vpop.f32.mrf.mxu1 }
 0x2e3   :  { %2058 = vst [vmem:[#allocation7 + $0x80] sm:$0xff] %v2048_v5  ;;  %2059 = vst [vmem:[#allocation7 + $0x88] sm:$0xff] %v2049_v42 }
 0x2e4   :  { %v1999_v18 = vpop.f32.mrf.mxu0  ;;  %v2038_v4 = vpop.f32.mrf.mxu1 }
 0x2e5   :  { %2318 = shalt.err (!%p2315_p0)
}
 0x2e6   :  { %s2347_s28 = smov 1152   ;;  %s2348_s29 = smov 72   ;;  %v2211_v48 = vpop.f32.mrf.mxu1 }
 0x2e7   :  { %2071 = dma.vmem_to_hbm [thread:$0]  %s2066_s26, 2304, %s3285_s2, [#allocation4], %s2347_s28, %s2347_s28, %s2348_s29  }
 0x2e8   :  { %2331 = dma.done.wait [#allocation4], 2304  }
 0x2e9   :  { %2332 = vsyncadd [#allocation4], 4294964992 }
 0x2ea   :  { %2075 = vsyncpa [#allocation3], 1 }
 0x2eb   :  { %2076 = vsyncpa [#allocation6], 1 }
 0x2ec   :  { %2077 = vsyncpa [#allocation4], 1 }

</bundles_post_ra>
